<compile_context>
chip_gen: v6e
topology: v6e:2x2x1
jax: 0.10.0
libtpu: 0.0.40
codegen_flags: <defaults>
</compile_context>

<pallas_src>
import functools

import jax
import jax.numpy as jnp
from jax.experimental import pallas as pl
from jax.experimental.pallas import tpu as pltpu


def _round_up(x, m):
    return (x + m - 1) // m * m


def _vmem_limit_bytes():
    """Per-generation scoped-VMEM budget: physical capacity minus headroom."""
    cap = 128 * 1024 * 1024
    try:
        info = pltpu.get_tpu_info()
        cap = int(getattr(info, "vmem_capacity_bytes", cap))
    except Exception:
        pass
    # Leave room for Mosaic internal scratch + f32 matmul/epilogue temporaries.
    return max(cap - 16 * 1024 * 1024, 32 * 1024 * 1024)


def _masked_log_softmax(logits_f32, out_dim):
    """log_softmax over the last dim with padded class lanes masked to -inf."""
    lane = jax.lax.broadcasted_iota(jnp.int32, logits_f32.shape, logits_f32.ndim - 1)
    logits = jnp.where(lane < out_dim, logits_f32, jnp.float32(-1e30))
    m = jnp.max(logits, axis=-1, keepdims=True)
    s = logits - m
    lse = jnp.log(jnp.sum(jnp.exp(s), axis=-1, keepdims=True))
    return s - lse


# ----------------------------------------------------------------------------
# Path 1: fully VMEM-resident fused kernel (small / medium graphs).
# ----------------------------------------------------------------------------
def _resident_gnn_kernel(a_ref, x_ref,
                         w1_ref, b1_ref, w2_ref, b2_ref,
                         w3_ref, b3_ref, w4_ref, b4_ref,
                         o_ref, *, out_dim, first_layer_ax_first):
    a = a_ref[...]          # (Np, Np)  bf16, single-buffered in VMEM, reused 4x
    x = x_ref[...]          # (Np, Fin) bf16

    # ---- layer 1: relu(A (X W1) + b1), reordered as (A X) W1 when cheaper ----
    if first_layer_ax_first:
        ax = jnp.dot(a, x, preferred_element_type=jnp.float32)
        h = jnp.dot(ax.astype(jnp.bfloat16), w1_ref[...],
                    preferred_element_type=jnp.float32)
    else:
        xw = jnp.dot(x, w1_ref[...], preferred_element_type=jnp.float32)
        h = jnp.dot(a, xw.astype(jnp.bfloat16),
                    preferred_element_type=jnp.float32)
    h = jnp.maximum(h + b1_ref[...], 0.0).astype(jnp.bfloat16)

    # ---- layers 2 and 3: relu(A (H W) + b); H stays a bf16 value (no round trip)
    for w_ref, b_ref in ((w2_ref, b2_ref), (w3_ref, b3_ref)):
        xw = jnp.dot(h, w_ref[...], preferred_element_type=jnp.float32)
        z = jnp.dot(a, xw.astype(jnp.bfloat16),
                    preferred_element_type=jnp.float32)
        h = jnp.maximum(z + b_ref[...], 0.0).astype(jnp.bfloat16)

    # ---- layer 4 + masked log_softmax epilogue ----
    xw = jnp.dot(h, w4_ref[...], preferred_element_type=jnp.float32)
    logits = jnp.dot(a, xw.astype(jnp.bfloat16),
                     preferred_element_type=jnp.float32) + b4_ref[...]
    o_ref[...] = _masked_log_softmax(logits, out_dim).astype(o_ref.dtype)


# ----------------------------------------------------------------------------
# Path 2: streaming fallback — A_hat stays in HBM; each layer streams row tiles
# of A through a manually double-buffered VMEM scratch (P4 pattern).
# ----------------------------------------------------------------------------
def _streaming_gnn_kernel(a_hbm, x_ref,
                          w1_ref, b1_ref, w2_ref, b2_ref,
                          w3_ref, b3_ref, w4_ref, b4_ref,
                          o_ref, h_ref, a_buf, sem, *, out_dim):
    n_tiles, tm, hid_pad = h_ref.shape

    def fetch(tile, slot):
        pltpu.make_async_copy(a_hbm.at[pl.ds(tile * tm, tm), :],
                              a_buf.at[slot], sem.at[slot]).start()

    def wait_slot(slot):
        # Placeholder src of identical shape; .wait() just waits on the semaphore.
        pltpu.make_async_copy(a_hbm.at[pl.ds(0, tm), :],
                              a_buf.at[slot], sem.at[slot]).wait()

    def propagate(xw_bf16, bias_f32, write_row):
        """For every row tile r: write_row(r, A[r,:] @ xw + bias)."""
        fetch(0, 0)

        @pl.loop(0, n_tiles)
        def _(tile):
            slot = tile & 1
            wait_slot(slot)

            @pl.when(tile + 1 < n_tiles)
            def _():
                fetch(tile + 1, 1 - slot)

            rows = jnp.dot(a_buf[slot], xw_bf16,
                           preferred_element_type=jnp.float32) + bias_f32
            write_row(tile, rows)

    def relu_write(tile, rows):
        h_ref[tile] = jnp.maximum(rows, 0.0).astype(jnp.bfloat16)

    def logsoftmax_write(tile, rows):
        o_ref[tile] = _masked_log_softmax(rows, out_dim).astype(o_ref.dtype)

    # ---- layer 1 ----
    xw = jnp.dot(x_ref[...], w1_ref[...],
                 preferred_element_type=jnp.float32).astype(jnp.bfloat16)
    propagate(xw, b1_ref[...], relu_write)

    # ---- layers 2 and 3 ----
    for w_ref, b_ref in ((w2_ref, b2_ref), (w3_ref, b3_ref)):
        h = h_ref[...].reshape(n_tiles * tm, hid_pad)
        xw = jnp.dot(h, w_ref[...],
                     preferred_element_type=jnp.float32).astype(jnp.bfloat16)
        propagate(xw, b_ref[...], relu_write)

    # ---- layer 4 + masked log_softmax ----
    h = h_ref[...].reshape(n_tiles * tm, hid_pad)
    xw = jnp.dot(h, w4_ref[...],
                 preferred_element_type=jnp.float32).astype(jnp.bfloat16)
    propagate(xw, b4_ref[...], logsoftmax_write)


# ----------------------------------------------------------------------------
# Host-side helpers
# ----------------------------------------------------------------------------
def _pad_cast_2d(m, rows, cols, dtype):
    m = m.astype(dtype)
    return jnp.pad(m, ((0, rows - m.shape[0]), (0, cols - m.shape[1])))


def _resident_vmem_bytes(n_pad, f_in_pad, hid_pad, out_pad):
    wide = max(f_in_pad, hid_pad, out_pad)
    return (n_pad * n_pad * 2                                            # A bf16
            + n_pad * f_in_pad * 2                                       # X bf16
            + 2 * (f_in_pad * hid_pad + 2 * hid_pad * hid_pad
                   + hid_pad * out_pad)                                  # weights bf16
            + 4 * (3 * hid_pad + out_pad)                                # biases f32
            + n_pad * out_pad * 4                                        # out f32
            + 2 * n_pad * wide * 4)                                      # f32 temporaries


def _pick_stream_tile(n_pad, vmem_limit):
    budget = vmem_limit // 4   # share of VMEM for the double-buffered A row tiles
    for tm in (1024, 512, 256, 128, 64, 32, 16):
        if n_pad % tm == 0 and 2 * tm * n_pad * 2 <= budget:
            return tm
    return 16


def build_normalized_adj_padded(edge_index, num_nodes, n_pad, dtype=jnp.bfloat16):
    """GCN-normalized adjacency D^{-1/2}(A+I)D^{-1/2}, built directly at padded shape.

    Duplicate edges scatter-ADD; explicit self-loops are replaced by a single
    weight-1 self-loop per real node (PyG add_remaining_self_loops). Padded
    rows/cols stay exactly zero.
    """
    src = edge_index[0]
    dst = edge_index[1]
    w = jnp.where(src != dst, 1.0, 0.0).astype(jnp.float32)
    a = jnp.zeros((n_pad, n_pad), jnp.float32)
    a = a.at[dst, src].add(w)                               # messages src -> dst
    idx = jnp.arange(n_pad)
    a = a.at[idx, idx].add((idx < num_nodes).astype(jnp.float32))
    deg = jnp.sum(a, axis=1)
    d_inv_sqrt = jnp.where(deg > 0, jax.lax.rsqrt(deg), 0.0)
    return (a * d_inv_sqrt[:, None] * d_inv_sqrt[None, :]).astype(dtype)


def gnn_forward_fused(a_hat_pad, x, params, *, output_dim,
                      force_streaming=False, stream_tile=None):
    """Fused 4-layer GCN forward; returns (N, output_dim) log-probabilities."""
    n, f_in = x.shape
    n_pad = a_hat_pad.shape[0]
    hidden = params[0][0].shape[1]
    assert params[3][0].shape[1] == output_dim
    assert a_hat_pad.shape == (n_pad, n_pad) and n_pad >= n

    f_in_pad = _round_up(f_in, 128)
    hid_pad = _round_up(hidden, 128)     # keep at 128 multiples (do NOT pad to 256)
    out_pad = _round_up(output_dim, 128)

    x_p = _pad_cast_2d(x, n_pad, f_in_pad, jnp.bfloat16)
    (w1, b1), (w2, b2), (w3, b3), (w4, b4) = params
    w1p = _pad_cast_2d(w1, f_in_pad, hid_pad, jnp.bfloat16)
    w2p = _pad_cast_2d(w2, hid_pad, hid_pad, jnp.bfloat16)
    w3p = _pad_cast_2d(w3, hid_pad, hid_pad, jnp.bfloat16)
    w4p = _pad_cast_2d(w4, hid_pad, out_pad, jnp.bfloat16)
    b1p = _pad_cast_2d(b1.reshape(1, -1), 1, hid_pad, jnp.float32)
    b2p = _pad_cast_2d(b2.reshape(1, -1), 1, hid_pad, jnp.float32)
    b3p = _pad_cast_2d(b3.reshape(1, -1), 1, hid_pad, jnp.float32)
    b4p = _pad_cast_2d(b4.reshape(1, -1), 1, out_pad, jnp.float32)

    vmem_limit = _vmem_limit_bytes()

    flops = (2 * n_pad * n_pad * (3 * hid_pad + out_pad)                  # A @ (XW) x4
             + 2 * n_pad * (f_in_pad * hid_pad + 2 * hid_pad * hid_pad
                            + hid_pad * out_pad))                          # XW matmuls
    transcendentals = n_pad * (out_pad + 1)                                # exp + log
    w_bytes = (2 * (f_in_pad * hid_pad + 2 * hid_pad * hid_pad + hid_pad * out_pad)
               + 4 * (3 * hid_pad + out_pad))
    io_bytes = n_pad * f_in_pad * 2 + w_bytes + n_pad * out_pad * 4

    vmem_spec = pl.BlockSpec(memory_space=pltpu.MemorySpace.VMEM)
    operands = (a_hat_pad, x_p, w1p, b1p, w2p, b2p, w3p, b3p, w4p, b4p)

    use_resident = (not force_streaming) and (
        _resident_vmem_bytes(n_pad, f_in_pad, hid_pad, out_pad)
        <= int(0.75 * vmem_limit))

    if use_resident:
        kernel = functools.partial(
            _resident_gnn_kernel, out_dim=output_dim,
            first_layer_ax_first=f_in_pad <= hid_pad)
        out_p = pl.pallas_call(
            kernel,
            out_shape=jax.ShapeDtypeStruct((n_pad, out_pad), jnp.float32),
            in_specs=[vmem_spec] * 10,
            out_specs=vmem_spec,
            compiler_params=pltpu.CompilerParams(vmem_limit_bytes=vmem_limit),
            cost_estimate=pl.CostEstimate(
                flops=flops, transcendentals=transcendentals,
                bytes_accessed=n_pad * n_pad * 2 + io_bytes),
        )(*operands)
        return out_p[:n, :output_dim]

    # Streaming path: A_hat stays in HBM; each layer re-streams its row tiles.
    tm = stream_tile if stream_tile is not None else _pick_stream_tile(n_pad, vmem_limit)
    assert n_pad % tm == 0, (n_pad, tm)
    n_tiles = n_pad // tm
    kernel = functools.partial(_streaming_gnn_kernel, out_dim=output_dim)
    out_p = pl.pallas_call(
        kernel,
        out_shape=jax.ShapeDtypeStruct((n_tiles, tm, out_pad), jnp.float32),
        in_specs=[pl.BlockSpec(memory_space=pl.ANY)] + [vmem_spec] * 9,
        out_specs=vmem_spec,
        scratch_shapes=[
            pltpu.VMEM((n_tiles, tm, hid_pad), jnp.bfloat16),   # resident H
            pltpu.VMEM((2, tm, n_pad), jnp.bfloat16),           # A row-tile dbl buffer
            pltpu.SemaphoreType.DMA((2,)),
        ],
        compiler_params=pltpu.CompilerParams(vmem_limit_bytes=vmem_limit),
        cost_estimate=pl.CostEstimate(
            flops=flops, transcendentals=transcendentals,
            bytes_accessed=4 * n_pad * n_pad * 2 + io_bytes),
    )(*operands)
    return out_p.reshape(n_pad, out_pad)[:n, :output_dim]


def init_params(key, input_dim, hidden_dim, output_dim):
    dims = [(input_dim, hidden_dim), (hidden_dim, hidden_dim),
            (hidden_dim, hidden_dim), (hidden_dim, output_dim)]
    params = []
    for fin, fout in dims:
        key, kw = jax.random.split(key)
        scale = jnp.sqrt(6.0 / (fin + fout))  # glorot-uniform, as in GCNConv
        w = jax.random.uniform(kw, (fin, fout), jnp.float32, -scale, scale)
        b = jnp.zeros((fout,), jnp.float32)
        params.append((w, b))
    return params


def gnn_model_forward(params, x, edge_index, *, force_streaming=False, stream_tile=None):
    """Equivalent of GNNModel.forward (the module's no_edge_attr=True path)."""
    n = x.shape[0]
    n_pad = _round_up(max(n, 8), 128)
    a_hat_pad = build_normalized_adj_padded(edge_index, n, n_pad, dtype=jnp.bfloat16)
    return gnn_forward_fused(a_hat_pad, x, params,
                             output_dim=params[3][0].shape[1],
                             force_streaming=force_streaming,
                             stream_tile=stream_tile)


def _reference_forward(params, x, edge_index):
    """Pure-JAX f32 reference for correctness checking."""
    n = x.shape[0]
    a_hat = build_normalized_adj_padded(edge_index, n, n, dtype=jnp.float32)
    h = x.astype(jnp.float32)
    for i, (w, b) in enumerate(params):
        h = a_hat @ (h @ w) + b
        if i < 3:
            h = jnp.maximum(h, 0.0)
    return jax.nn.log_softmax(h, axis=1)


if __name__ == "__main__":
    key = jax.random.PRNGKey(0)
    num_nodes = 16
    input_dim = 8
    hidden_dim = 32
    output_dim = 4
    num_edges = 40

    k_x, k_src, k_dst, k_p = jax.random.split(key, 4)
    x = jax.random.normal(k_x, (num_nodes, input_dim), jnp.float32)
    src = jax.random.randint(k_src, (num_edges,), 0, num_nodes)
    dst = jax.random.randint(k_dst, (num_edges,), 0, num_nodes)
    edge_index = jnp.stack([src, dst], axis=0)

    params = init_params(k_p, input_dim, hidden_dim, output_dim)
    ref = _reference_forward(params, x, edge_index)

    # ---- default (VMEM-resident) path ----
    out = jax.block_until_ready(gnn_model_forward(params, x, edge_index))
    assert out.shape == (num_nodes, output_dim)
    row_sums = jnp.exp(out).sum(axis=1)
    assert bool(jnp.all(jnp.abs(row_sums - 1.0) < 1e-3)), row_sums
    max_err = float(jnp.max(jnp.abs(out - ref)))
    assert max_err < 0.15, f"resident: max |out - ref| = {max_err}"

    # ---- streaming (large-N fallback) path, forced at small size to validate ----
    out_s = jax.block_until_ready(
        gnn_model_forward(params, x, edge_index, force_streaming=True, stream_tile=64))
    assert out_s.shape == (num_nodes, output_dim)
    row_sums_s = jnp.exp(out_s).sum(axis=1)
    assert bool(jnp.all(jnp.abs(row_sums_s - 1.0) < 1e-3)), row_sums_s
    max_err_s = float(jnp.max(jnp.abs(out_s - ref)))
    assert max_err_s < 0.15, f"streaming: max |out - ref| = {max_err_s}"

    print("KERNEL_OK")
</pallas_src>

<mosaic_0001>
module attributes {stable_mosaic.version = 11 : i64} {
  func.func @_resident_gnn_kernel(%arg0: memref<128x128xbf16, #tpu.memory_space<vmem>>, %arg1: memref<128x128xbf16, #tpu.memory_space<vmem>>, %arg2: memref<128x128xbf16, #tpu.memory_space<vmem>>, %arg3: memref<1x128xf32, #tpu.memory_space<vmem>>, %arg4: memref<128x128xbf16, #tpu.memory_space<vmem>>, %arg5: memref<1x128xf32, #tpu.memory_space<vmem>>, %arg6: memref<128x128xbf16, #tpu.memory_space<vmem>>, %arg7: memref<1x128xf32, #tpu.memory_space<vmem>>, %arg8: memref<128x128xbf16, #tpu.memory_space<vmem>>, %arg9: memref<1x128xf32, #tpu.memory_space<vmem>>, %arg10: memref<128x128xf32, #tpu.memory_space<vmem>>) attributes {dimension_semantics = [], scalar_prefetch = 0 : i64, scratch_operands = 0 : i64, tpu.core_type = #tpu.core_type<tc>} {
    %c0 = arith.constant 0 : index
    %c0_0 = arith.constant 0 : index
    %0 = vector.load %arg0[%c0, %c0_0] : memref<128x128xbf16, #tpu.memory_space<vmem>>, vector<128x128xbf16>
    %c0_1 = arith.constant 0 : index
    %c0_2 = arith.constant 0 : index
    %1 = vector.load %arg1[%c0_1, %c0_2] : memref<128x128xbf16, #tpu.memory_space<vmem>>, vector<128x128xbf16>
    %cst = arith.constant dense<0.000000e+00> : vector<128x128xf32>
    %2 = tpu.matmul %0, %1, %cst {dimension_numbers = #tpu.dot_dimension_numbers<[1], [0], [0], [1], [0, 0, 1, 1], [], []>} : vector<128x128xbf16>, vector<128x128xbf16>, vector<128x128xf32> -> vector<128x128xf32>
    %3 = arith.truncf %2 : vector<128x128xf32> to vector<128x128xbf16>
    %c0_3 = arith.constant 0 : index
    %c0_4 = arith.constant 0 : index
    %4 = vector.load %arg2[%c0_3, %c0_4] : memref<128x128xbf16, #tpu.memory_space<vmem>>, vector<128x128xbf16>
    %cst_5 = arith.constant dense<0.000000e+00> : vector<128x128xf32>
    %5 = tpu.matmul %3, %4, %cst_5 {dimension_numbers = #tpu.dot_dimension_numbers<[1], [0], [0], [1], [0, 0, 1, 1], [], []>} : vector<128x128xbf16>, vector<128x128xbf16>, vector<128x128xf32> -> vector<128x128xf32>
    %c0_6 = arith.constant 0 : index
    %c0_7 = arith.constant 0 : index
    %6 = vector.load %arg3[%c0_6, %c0_7] : memref<1x128xf32, #tpu.memory_space<vmem>>, vector<1x128xf32>
    %7 = vector.broadcast %6 : vector<1x128xf32> to vector<128x128xf32>
    %8 = arith.addf %5, %7 : vector<128x128xf32>
    %cst_8 = arith.constant 0.000000e+00 : f32
    %9 = vector.broadcast %cst_8 : f32 to vector<128x128xf32>
    %10 = arith.maximumf %8, %9 : vector<128x128xf32>
    %11 = arith.truncf %10 : vector<128x128xf32> to vector<128x128xbf16>
    %c0_9 = arith.constant 0 : index
    %c0_10 = arith.constant 0 : index
    %12 = vector.load %arg4[%c0_9, %c0_10] : memref<128x128xbf16, #tpu.memory_space<vmem>>, vector<128x128xbf16>
    %cst_11 = arith.constant dense<0.000000e+00> : vector<128x128xf32>
    %13 = tpu.matmul %11, %12, %cst_11 {dimension_numbers = #tpu.dot_dimension_numbers<[1], [0], [0], [1], [0, 0, 1, 1], [], []>} : vector<128x128xbf16>, vector<128x128xbf16>, vector<128x128xf32> -> vector<128x128xf32>
    %14 = arith.truncf %13 : vector<128x128xf32> to vector<128x128xbf16>
    %cst_12 = arith.constant dense<0.000000e+00> : vector<128x128xf32>
    %15 = tpu.matmul %0, %14, %cst_12 {dimension_numbers = #tpu.dot_dimension_numbers<[1], [0], [0], [1], [0, 0, 1, 1], [], []>} : vector<128x128xbf16>, vector<128x128xbf16>, vector<128x128xf32> -> vector<128x128xf32>
    %c0_13 = arith.constant 0 : index
    %c0_14 = arith.constant 0 : index
    %16 = vector.load %arg5[%c0_13, %c0_14] : memref<1x128xf32, #tpu.memory_space<vmem>>, vector<1x128xf32>
    %17 = vector.broadcast %16 : vector<1x128xf32> to vector<128x128xf32>
    %18 = arith.addf %15, %17 : vector<128x128xf32>
    %cst_15 = arith.constant 0.000000e+00 : f32
    %19 = vector.broadcast %cst_15 : f32 to vector<128x128xf32>
    %20 = arith.maximumf %18, %19 : vector<128x128xf32>
    %21 = arith.truncf %20 : vector<128x128xf32> to vector<128x128xbf16>
    %c0_16 = arith.constant 0 : index
    %c0_17 = arith.constant 0 : index
    %22 = vector.load %arg6[%c0_16, %c0_17] : memref<128x128xbf16, #tpu.memory_space<vmem>>, vector<128x128xbf16>
    %cst_18 = arith.constant dense<0.000000e+00> : vector<128x128xf32>
    %23 = tpu.matmul %21, %22, %cst_18 {dimension_numbers = #tpu.dot_dimension_numbers<[1], [0], [0], [1], [0, 0, 1, 1], [], []>} : vector<128x128xbf16>, vector<128x128xbf16>, vector<128x128xf32> -> vector<128x128xf32>
    %24 = arith.truncf %23 : vector<128x128xf32> to vector<128x128xbf16>
    %cst_19 = arith.constant dense<0.000000e+00> : vector<128x128xf32>
    %25 = tpu.matmul %0, %24, %cst_19 {dimension_numbers = #tpu.dot_dimension_numbers<[1], [0], [0], [1], [0, 0, 1, 1], [], []>} : vector<128x128xbf16>, vector<128x128xbf16>, vector<128x128xf32> -> vector<128x128xf32>
    %c0_20 = arith.constant 0 : index
    %c0_21 = arith.constant 0 : index
    %26 = vector.load %arg7[%c0_20, %c0_21] : memref<1x128xf32, #tpu.memory_space<vmem>>, vector<1x128xf32>
    %27 = vector.broadcast %26 : vector<1x128xf32> to vector<128x128xf32>
    %28 = arith.addf %25, %27 : vector<128x128xf32>
    %cst_22 = arith.constant 0.000000e+00 : f32
    %29 = vector.broadcast %cst_22 : f32 to vector<128x128xf32>
    %30 = arith.maximumf %28, %29 : vector<128x128xf32>
    %31 = arith.truncf %30 : vector<128x128xf32> to vector<128x128xbf16>
    %c0_23 = arith.constant 0 : index
    %c0_24 = arith.constant 0 : index
    %32 = vector.load %arg8[%c0_23, %c0_24] : memref<128x128xbf16, #tpu.memory_space<vmem>>, vector<128x128xbf16>
    %cst_25 = arith.constant dense<0.000000e+00> : vector<128x128xf32>
    %33 = tpu.matmul %31, %32, %cst_25 {dimension_numbers = #tpu.dot_dimension_numbers<[1], [0], [0], [1], [0, 0, 1, 1], [], []>} : vector<128x128xbf16>, vector<128x128xbf16>, vector<128x128xf32> -> vector<128x128xf32>
    %34 = arith.truncf %33 : vector<128x128xf32> to vector<128x128xbf16>
    %cst_26 = arith.constant dense<0.000000e+00> : vector<128x128xf32>
    %35 = tpu.matmul %0, %34, %cst_26 {dimension_numbers = #tpu.dot_dimension_numbers<[1], [0], [0], [1], [0, 0, 1, 1], [], []>} : vector<128x128xbf16>, vector<128x128xbf16>, vector<128x128xf32> -> vector<128x128xf32>
    %c0_27 = arith.constant 0 : index
    %c0_28 = arith.constant 0 : index
    %36 = vector.load %arg9[%c0_27, %c0_28] : memref<1x128xf32, #tpu.memory_space<vmem>>, vector<1x128xf32>
    %37 = vector.broadcast %36 : vector<1x128xf32> to vector<128x128xf32>
    %38 = arith.addf %35, %37 : vector<128x128xf32>
    %39 = tpu.iota {dimensions = array<i32: 1>} : vector<128x128xi32>
    %c4_i32 = arith.constant 4 : i32
    %40 = vector.broadcast %c4_i32 : i32 to vector<128x128xi32>
    %41 = arith.cmpi slt, %39, %40 : vector<128x128xi32>
    %cst_29 = arith.constant -1.000000e+30 : f32
    %42 = vector.broadcast %cst_29 : f32 to vector<128x128xf32>
    %43 = arith.select %41, %38, %42 : vector<128x128xi1>, vector<128x128xf32>
    %cst_30 = arith.constant dense<0xFF800000> : vector<128xf32>
    %44 = vector.multi_reduction <maximumf>, %43, %cst_30 [1] : vector<128x128xf32> to vector<128xf32>
    %45 = vector.shape_cast %44 : vector<128xf32> to vector<128x1xf32>
    %46 = vector.broadcast %45 : vector<128x1xf32> to vector<128x128xf32>
    %47 = arith.subf %43, %46 : vector<128x128xf32>
    %48 = math.exp %47 : vector<128x128xf32>
    %cst_31 = arith.constant dense<0.000000e+00> : vector<128xf32>
    %49 = vector.multi_reduction <add>, %48, %cst_31 [1] : vector<128x128xf32> to vector<128xf32>
    %50 = vector.shape_cast %49 : vector<128xf32> to vector<128x1xf32>
    %51 = math.log %50 : vector<128x1xf32>
    %52 = vector.broadcast %51 : vector<128x1xf32> to vector<128x128xf32>
    %53 = arith.subf %47, %52 : vector<128x128xf32>
    %c0_32 = arith.constant 0 : index
    %c0_33 = arith.constant 0 : index
    %54 = vector.load %arg10[%c0_32, %c0_33] : memref<128x128xf32, #tpu.memory_space<vmem>>, vector<128x128xf32>
    tpu.vector_store %arg10[%c0_32, %c0_33], %53 {strides = array<i32>} : memref<128x128xf32, #tpu.memory_space<vmem>>, vector<128x128xf32>,
    return
  }
}

</mosaic_0001>

<bundles_post_ra>
// kernel: tpu_custom_call.1
= control target key start
LH: loop header
LB: loop body
LE: loop exit
PB: predicated region body
PF: predicated region fallthrough
CT: control target
= control target key end

     0   :  { %15 = vsyncpa [#allocation3], 0  ;;  %s2623_s0 = inlined_call_operand.hbm [shape: bf16[128,128], index: 0, kind: input, shape index: {}]   ;;  %s2624_s1 = inlined_call_operand.hbm [shape: bf16[128,128], index: 1, kind: input, shape index: {}]   ;;  %s2625_s2 = inlined_call_operand.hbm [shape: bf16[128,128], index: 2, kind: input, shape index: {}]   ;;  %s2626_s3 = inlined_call_operand.vmem [shape: f32[1,128], index: 3, kind: input, shape index: {}]   ;;  %s2627_s4 = inlined_call_operand.hbm [shape: bf16[128,128], index: 4, kind: input, shape index: {}]   ;;  %s2628_s5 = inlined_call_operand.vmem [shape: f32[1,128], index: 5, kind: input, shape index: {}]   ;;  %s2629_s6 = inlined_call_operand.hbm [shape: bf16[128,128], index: 6, kind: input, shape index: {}]   ;;  %s2630_s7 = inlined_call_operand.vmem [shape: f32[1,128], index: 7, kind: input, shape index: {}]   ;;  %s2631_s8 = inlined_call_operand.hbm [shape: bf16[128,128], index: 8, kind: input, shape index: {}]   ;;  %s2632_s9 = inlined_call_operand.vmem [shape: f32[1,128], index: 9, kind: input, shape index: {}]   ;;  %s2633_s10 = inlined_call_operand.hbm [shape: f32[128,128], index: 10, kind: output, shape index: {}]  }
   0x1   :  { %16 = vsyncpa [#allocation6], 0 }
   0x2   :  { %17 = vsyncpa [#allocation9], 0 }
   0x3   :  { %18 = vsyncpa [#allocation12], 0 }
   0x4   :  { %19 = vsyncpa [#allocation4], 0  ;;  %s2335_s13 = smov [#allocation5]   ;;  %s2336_s15 = smov [#allocation8]  }
   0x5   :  { %s37_s14 = sshll.u32 %s2335_s13, 4  ;;  %s63_s16 = sshll.u32 %s2336_s15, 4  ;;  %s38_s14 = int_to_ptr.vmem [resolvable:$true] %s37_s14  ;;  %s64_s16 = int_to_ptr.vmem [resolvable:$true] %s63_s16 }
   0x6   :  { %s2193_s17 = scalar_lea.vmem %s38_s14, 1024  ;;  %p2198_p1 = scmp.lt.s32.totalorder %s38_s14, %s38_s14 }
   0x7   :  { %p2194_p0 = scmp.ne.s32.totalorder %s38_s14, %s2193_s17  ;;  %p2199_p2 = scmp.lt.s32.totalorder %s2193_s17, %s2193_s17 }
   0x9   :  { %p2200_p3 = por %p2199_p2, %p2198_p1 }
   0xb   :  { %p2201_p4 = pnand %p2200_p3, %p2194_p0 }
   0xd   :  { %2204 = shalt.err (!%p2201_p4)
}
   0xe   :  { %s2337_s18 = smov 64   ;;  %s2338_s19 = smov 4  }
   0xf   :  { %43 = dma.hbm_to_vmem [thread:$0]  %s2624_s1, 1024, %s38_s14, [#allocation6], %s2337_s18, %s2337_s18, %s2338_s19  }
  0x10   :  { %s2213_s22 = scalar_lea.vmem %s64_s16, 1024  ;;  %p2218_p6 = scmp.lt.s32.totalorder %s64_s16, %s64_s16 }
  0x11   :  { %p2214_p5 = scmp.ne.s32.totalorder %s64_s16, %s2213_s22  ;;  %p2219_p7 = scmp.lt.s32.totalorder %s2213_s22, %s2213_s22 }
  0x13   :  { %p2220_p8 = por %p2219_p7, %p2218_p6 }
  0x15   :  { %p2221_p9 = pnand %p2220_p8, %p2214_p5 }
  0x17   :  { %2224 = shalt.err (!%p2221_p9)
}
  0x18   :  { %69 = dma.hbm_to_vmem [thread:$0]  %s2627_s4, 1024, %s64_s16, [#allocation9], %s2337_s18, %s2337_s18, %s2338_s19  }
  0x19   :  { %s2339_s25 = smov [#allocation2]   ;;  %s2340_s27 = smov [#allocation7]  }
  0x1a   :  { %s25_s26 = sshll.u32 %s2339_s25, 4  ;;  %s49_s28 = sshll.u32 %s2340_s27, 4  ;;  %s26_s26 = int_to_ptr.vmem [resolvable:$true] %s25_s26  ;;  %s50_s28 = int_to_ptr.vmem [resolvable:$true] %s49_s28 }
  0x1b   :  { %s2233_s1 = scalar_lea.vmem %s26_s26, 1024  ;;  %p2238_p11 = scmp.lt.s32.totalorder %s26_s26, %s26_s26 }
  0x1c   :  { %p2234_p10 = scmp.ne.s32.totalorder %s26_s26, %s2233_s1  ;;  %p2239_p12 = scmp.lt.s32.totalorder %s2233_s1, %s2233_s1 }
  0x1e   :  { %p2240_p13 = por %p2239_p12, %p2238_p11 }
  0x20   :  { %p2241_p0 = pnand %p2240_p13, %p2234_p10 }
  0x22   :  { %2244 = shalt.err (!%p2241_p0)
}
  0x23   :  { %31 = dma.hbm_to_vmem [thread:$0]  %s2623_s0, 1024, %s26_s26, [#allocation3], %s2337_s18, %s2337_s18, %s2338_s19  }
  0x24   :  { %s2253_s4 = scalar_lea.vmem %s50_s28, 1024  ;;  %p2258_p2 = scmp.lt.s32.totalorder %s50_s28, %s50_s28 }
  0x25   :  { %p2254_p1 = scmp.ne.s32.totalorder %s50_s28, %s2253_s4  ;;  %p2259_p3 = scmp.lt.s32.totalorder %s2253_s4, %s2253_s4 }
  0x27   :  { %p2260_p4 = por %p2259_p3, %p2258_p2 }
  0x29   :  { %p2261_p5 = pnand %p2260_p4, %p2254_p1 }
  0x2b   :  { %2264 = shalt.err (!%p2261_p5)
}
  0x2c   :  { %55 = dma.hbm_to_vmem [thread:$0]  %s2625_s2, 1024, %s50_s28, [#allocation6], %s2337_s18, %s2337_s18, %s2338_s19  }
  0x2d   :  { %s2341_s13 = smov [#allocation10]   ;;  %s2342_s15 = smov [#allocation11]  }
  0x2e   :  { %s77_s14 = sshll.u32 %s2341_s13, 4  ;;  %s91_s16 = sshll.u32 %s2342_s15, 4  ;;  %s78_s14 = int_to_ptr.vmem [resolvable:$true] %s77_s14  ;;  %s92_s16 = int_to_ptr.vmem [resolvable:$true] %s91_s16 }
  0x2f   :  { %s2273_s0 = scalar_lea.vmem %s78_s14, 1024  ;;  %p2278_p7 = scmp.lt.s32.totalorder %s78_s14, %s78_s14 }
  0x30   :  { %p2274_p6 = scmp.ne.s32.totalorder %s78_s14, %s2273_s0  ;;  %p2279_p8 = scmp.lt.s32.totalorder %s2273_s0, %s2273_s0 }
  0x32   :  { %p2280_p9 = por %p2279_p8, %p2278_p7 }
  0x34   :  { %p2281_p10 = pnand %p2280_p9, %p2274_p6 }
  0x36   :  { %2284 = shalt.err (!%p2281_p10)
}
  0x37   :  { %83 = dma.hbm_to_vmem [thread:$0]  %s2629_s6, 1024, %s78_s14, [#allocation9], %s2337_s18, %s2337_s18, %s2338_s19  }
  0x38   :  { %s2293_s2 = scalar_lea.vmem %s92_s16, 1024  ;;  %p2298_p12 = scmp.lt.s32.totalorder %s92_s16, %s92_s16 }
  0x39   :  { %p2294_p11 = scmp.ne.s32.totalorder %s92_s16, %s2293_s2  ;;  %p2299_p13 = scmp.lt.s32.totalorder %s2293_s2, %s2293_s2 }
  0x3b   :  { %p2300_p0 = por %p2299_p13, %p2298_p12 }
  0x3d   :  { %p2301_p1 = pnand %p2300_p0, %p2294_p11 }
  0x3f   :  { %2304 = shalt.err (!%p2301_p1)
}
  0x40   :  { %97 = dma.hbm_to_vmem [thread:$0]  %s2631_s8, 1024, %s92_s16, [#allocation12], %s2337_s18, %s2337_s18, %s2338_s19  }
  0x41   :  { %2325 = dma.done.wait [#allocation3], 1024  }
  0x42   :  { %2326 = vsyncadd [#allocation3], 4294966272 }
  0x43   :  { %2327 = dma.done.wait [#allocation6], 2048  }
  0x44   :  { %2328 = vsyncadd [#allocation6], 4294965248 }
  0x45   :  { %2329 = dma.done.wait [#allocation9], 2048  }
  0x46   :  { %2330 = vsyncadd [#allocation9], 4294965248 }
  0x47   :  { %2331 = dma.done.wait [#allocation12], 1024  }
  0x48   :  { %2332 = vsyncadd [#allocation12], 4294966272  ;;  %v2073_v0 = vld [vmem:[#allocation5 + $0x38] sm:$0xff]   ;;  %v2074_v1 = vld [vmem:[#allocation5 + $0x30] sm:$0xff]  }
  0x49   :  { %1806 = vmatprep.subr.bf16.mxu0 %v2073_v0  ;;  %v2075_v2 = vld [vmem:[#allocation5 + $0x28] sm:$0xff]   ;;  %v2076_v3 = vld [vmem:[#allocation5 + $0x20] sm:$0xff]   ;;  %v2077_v5 = vld [vmem:[#allocation5 + $0x18] sm:$0xff]  }
  0x4a   :  { %1807 = vmatpush3.bf16.msra.mxu0 %v2073_v0  ;;  %v2437_v4 = vld [vmem:[#allocation2] sm:$0xff]   ;;  %v2078_v6 = vld [vmem:[#allocation5 + $0x10] sm:$0xff]   ;;  %v2089_v7 = vld [vmem:[#allocation7 + $0x38] sm:$0xff]  }
  0x4b   :  { %1808 = vmatprep.subr.bf16.mxu0 %v2074_v1  ;;  %1822 = vmatprep.mubr.bf16.mxu0 %v2437_v4  ;;  %v2090_v8 = vld [vmem:[#allocation7 + $0x30] sm:$0xff]   ;;  %v2079_v9 = vld [vmem:[#allocation5 + $0x8] sm:$0xff]   ;;  %v2080_v11 = vld [vmem:[#allocation5] sm:$0xff]  }
  0x4c   :  { %1838 = vmatprep.subr.bf16.mxu1 %v2089_v7  ;;  %v2091_v10 = vld [vmem:[#allocation7 + $0x28] sm:$0xff]   ;;  %v2092_v12 = vld [vmem:[#allocation7 + $0x20] sm:$0xff]   ;;  %v2093_v13 = vld [vmem:[#allocation7 + $0x18] sm:$0xff]  }
  0x4d   :  { %1839 = vmatpush3.bf16.msra.mxu1 %v2089_v7  ;;  %v2440_v14 = vld [vmem:[#allocation2 + $0x8] sm:$0xff]   ;;  %v2442_v15 = vld [vmem:[#allocation2 + $0x10] sm:$0xff]   ;;  %v2446_v17 = vld [vmem:[#allocation2 + $0x18] sm:$0xff]  }
  0x4e   :  { %1809 = vmatpush3.bf16.msra.mxu0 %v2074_v1  ;;  %1840 = vmatprep.subr.bf16.mxu1 %v2090_v8  ;;  %v2094_v16 = vld [vmem:[#allocation7 + $0x10] sm:$0xff]   ;;  %v2448_v18 = vld [vmem:[#allocation2 + $0x20] sm:$0xff]   ;;  %v2452_v19 = vld [vmem:[#allocation2 + $0x28] sm:$0xff]  }
  0x4f   :  { %1810 = vmatprep.subr.bf16.mxu0 %v2075_v2  ;;  %v2454_v20 = vld [vmem:[#allocation2 + $0x30] sm:$0xff]   ;;  %v2458_v21 = vld [vmem:[#allocation2 + $0x38] sm:$0xff]   ;;  %v2095_v22 = vld [vmem:[#allocation7 + $0x8] sm:$0xff]  }
  0x50   :  { %v2096_v23 = vld [vmem:[#allocation7] sm:$0xff]   ;;  %v2097_v24 = vld [vmem:[#allocation8 + $0x38] sm:$0xff]   ;;  %v2098_v25 = vld [vmem:[#allocation8 + $0x30] sm:$0xff]  }
  0x51   :  { %1841 = vmatpush3.bf16.msra.mxu1 %v2090_v8  ;;  %v2099_v26 = vld [vmem:[#allocation8 + $0x28] sm:$0xff]   ;;  %v2100_v27 = vld [vmem:[#allocation8 + $0x20] sm:$0xff]   ;;  %v2101_v28 = vld [vmem:[#allocation8 + $0x18] sm:$0xff]  }
  0x52   :  { %1811 = vmatpush3.bf16.msra.mxu0 %v2075_v2  ;;  %1842 = vmatprep.subr.bf16.mxu1 %v2091_v10  ;;  %v2102_v53 = vld [vmem:[#allocation8 + $0x10] sm:$0xff]   ;;  %v2103_v54 = vld [vmem:[#allocation8 + $0x8] sm:$0xff]   ;;  %v2104_v55 = vld [vmem:[#allocation8] sm:$0xff]  }
  0x53   :  { %1812 = vmatprep.subr.bf16.mxu0 %v2076_v3  ;;  %v1642_v58 = vld [vmem:[%s2626_s3] ss:$0 sm:$0xff] }
  0x55   :  { %1843 = vmatpush3.bf16.msra.mxu1 %v2091_v10 }
  0x56   :  { %1813 = vmatpush3.bf16.msra.mxu0 %v2076_v3  ;;  %1844 = vmatprep.subr.bf16.mxu1 %v2092_v12 }
  0x57   :  { %1814 = vmatprep.subr.bf16.mxu0 %v2077_v5 }
  0x59   :  { %1845 = vmatpush3.bf16.msra.mxu1 %v2092_v12 }
  0x5a   :  { %1815 = vmatpush3.bf16.msra.mxu0 %v2077_v5  ;;  %1846 = vmatprep.subr.bf16.mxu1 %v2093_v13 }
  0x5b   :  { %1816 = vmatprep.subr.bf16.mxu0 %v2078_v6 }
  0x5d   :  { %1847 = vmatpush3.bf16.msra.mxu1 %v2093_v13 }
  0x5e   :  { %1817 = vmatpush3.bf16.msra.mxu0 %v2078_v6  ;;  %1848 = vmatprep.subr.bf16.mxu1 %v2094_v16 }
  0x5f   :  { %1818 = vmatprep.subr.bf16.mxu0 %v2079_v9 }
  0x61   :  { %1849 = vmatpush3.bf16.msra.mxu1 %v2094_v16 }
  0x62   :  { %1819 = vmatpush3.bf16.msra.mxu0 %v2079_v9  ;;  %1850 = vmatprep.subr.bf16.mxu1 %v2095_v22 }
  0x63   :  { %1820 = vmatprep.subr.bf16.mxu0 %v2080_v11 }
  0x65   :  { %1851 = vmatpush3.bf16.msra.mxu1 %v2095_v22 }
  0x66   :  { %1821 = vmatpush3.bf16.msra.mxu0 %v2080_v11  ;;  %1852 = vmatprep.subr.bf16.mxu1 %v2096_v23 }
  0x67   :  { %1870 = vmatprep.subr.bf16.mxu0 %v2097_v24 }
  0x69   :  { %1823 = vmatmul.mubr.bf16.vlgmr.msra.gmra.mxu0 %v2440_v14  ;;  %1853 = vmatpush3.bf16.msra.mxu1 %v2096_v23 }
  0x6a   :  { %1826 = vmatprep.mubr.bf16.mxu0 %v2442_v15  ;;  %1871 = vmatpush3.bf16.msra.mxu0 %v2097_v24 }
  0x6b   :  { %1872 = vmatprep.subr.bf16.mxu0 %v2098_v25 }
  0x6e   :  { %1873 = vmatpush3.bf16.msra.mxu0 %v2098_v25 }
  0x6f   :  { %1874 = vmatprep.subr.bf16.mxu0 %v2099_v26 }
  0x71   :  { %1827 = vmatmul.mubr.bf16.gmra.mxu0 %v2446_v17 }
  0x72   :  { %1830 = vmatprep.mubr.bf16.mxu0 %v2448_v18  ;;  %1875 = vmatpush3.bf16.msra.mxu0 %v2099_v26 }
  0x73   :  { %1876 = vmatprep.subr.bf16.mxu0 %v2100_v27 }
  0x76   :  { %1877 = vmatpush3.bf16.msra.mxu0 %v2100_v27 }
  0x77   :  { %1878 = vmatprep.subr.bf16.mxu0 %v2101_v28 }
  0x79   :  { %1831 = vmatmul.mubr.bf16.gmra.mxu0 %v2452_v19 }
  0x7a   :  { %1834 = vmatprep.mubr.bf16.mxu0 %v2454_v20  ;;  %1879 = vmatpush3.bf16.msra.mxu0 %v2101_v28 }
  0x7b   :  { %1880 = vmatprep.subr.bf16.mxu0 %v2102_v53 }
  0x7e   :  { %1881 = vmatpush3.bf16.msra.mxu0 %v2102_v53 }
  0x7f   :  { %1882 = vmatprep.subr.bf16.mxu0 %v2103_v54 }
  0x81   :  { %1835 = vmatmul.mubr.bf16.gmra.mxu0 %v2458_v21 }
  0x82   :  { %1883 = vmatpush3.bf16.msra.mxu0 %v2103_v54 }
  0x83   :  { %1884 = vmatprep.subr.bf16.mxu0 %v2104_v55 }
  0x86   :  { %1885 = vmatpush3.bf16.msra.mxu0 %v2104_v55 }
 0x129   :  { %v1824_v29 = vpop.f32.mrf.mxu0 }
 0x12b   :  { %v281_v30 = vpop.f32.mrf.mxu0 }
 0x12d   :  { %v1825_v31 = vpop.f32.mrf.mxu0 }
 0x12e   :  { %v345_v34 = vpack.c.bf16 %v1825_v31, %v1824_v29 }
 0x12f   :  { %v284_v32 = vpop.f32.mrf.mxu0 }
 0x130   :  { %v344_v33 = vpack.c.bf16 %v284_v32, %v281_v30 }
 0x131   :  { %v1828_v35 = vpop.f32.mrf.mxu0 }
 0x132   :  { %1854 = vmatprep.mubr.bf16.mxu1 %v344_v33 }
 0x133   :  { %v297_v36 = vpop.f32.mrf.mxu0  ;;  %1855 = vmatmul.mubr.bf16.vlgmr.msra.gmra.mxu1 %v345_v34 }
 0x135   :  { %v1829_v37 = vpop.f32.mrf.mxu0 }
 0x136   :  { %v347_v40 = vpack.c.bf16 %v1829_v37, %v1828_v35 }
 0x137   :  { %v300_v38 = vpop.f32.mrf.mxu0 }
 0x138   :  { %v346_v39 = vpack.c.bf16 %v300_v38, %v297_v36 }
 0x139   :  { %v1832_v41 = vpop.f32.mrf.mxu0 }
 0x13a   :  { %1858 = vmatprep.mubr.bf16.mxu1 %v346_v39 }
 0x13b   :  { %v313_v42 = vpop.f32.mrf.mxu0  ;;  %1859 = vmatmul.mubr.bf16.gmra.mxu1 %v347_v40 }
 0x13d   :  { %v1833_v43 = vpop.f32.mrf.mxu0 }
 0x13e   :  { %v349_v46 = vpack.c.bf16 %v1833_v43, %v1832_v41 }
 0x13f   :  { %v316_v44 = vpop.f32.mrf.mxu0 }
 0x140   :  { %v348_v45 = vpack.c.bf16 %v316_v44, %v313_v42 }
 0x141   :  { %v1836_v47 = vpop.f32.mrf.mxu0 }
 0x142   :  { %1862 = vmatprep.mubr.bf16.mxu1 %v348_v45 }
 0x143   :  { %v329_v48 = vpop.f32.mrf.mxu0  ;;  %1863 = vmatmul.mubr.bf16.gmra.mxu1 %v349_v46 }
 0x145   :  { %v1837_v49 = vpop.f32.mrf.mxu0 }
 0x146   :  { %v351_v52 = vpack.c.bf16 %v1837_v49, %v1836_v47 }
 0x147   :  { %v332_v50 = vpop.f32.mrf.mxu0 }
 0x148   :  { %v350_v51 = vpack.c.bf16 %v332_v50, %v329_v48 }
 0x14a   :  { %1866 = vmatprep.mubr.bf16.mxu1 %v350_v51 }
 0x14b   :  { %1867 = vmatmul.mubr.bf16.gmra.mxu1 %v351_v52 }
 0x14c   :  { %1918 = vmatprep.mubr.bf16.mxu1 %v2437_v4 }
 0x1f3   :  { %v1856_v56 = vpop.f32.mrf.mxu1 }
 0x1f4   :  { %v466_v62 = vadd.f32 %v1856_v56, %v1642_v58 }
 0x1f5   :  { %v457_v57 = vpop.f32.mrf.mxu1 }
 0x1f6   :  { %v458_v60 = vadd.f32 %v1642_v58, %v457_v57  ;;  %v522_v6 = vmax.f32 %v466_v62, 0.0  ;;  %v2105_v57 = vld [vmem:[#allocation10 + $0x38] sm:$0xff]  }
 0x1f7   :  { %v1857_v59 = vpop.f32.mrf.mxu1  ;;  %1934 = vmatprep.subr.bf16.mxu0 %v2105_v57 }
 0x1f8   :  { %v469_v61 = vadd.f32 %v1857_v59, %v1642_v58  ;;  %v520_v3 = vmax.f32 %v458_v60, 0.0  ;;  %v2106_v59 = vld [vmem:[#allocation10 + $0x30] sm:$0xff]   ;;  %v2107_v60 = vld [vmem:[#allocation10 + $0x28] sm:$0xff]  }
 0x1f9   :  { %v460_v63 = vpop.f32.mrf.mxu1 }
 0x1fa   :  { %v461_v0 = vadd.f32 %v1642_v58, %v460_v63  ;;  %v523_v1 = vmax.f32 %v469_v61, 0.0  ;;  %v2108_v61 = vld [vmem:[#allocation10 + $0x20] sm:$0xff]  }
 0x1fb   :  { %v1860_v2 = vpop.f32.mrf.mxu1 }
 0x1fc   :  { %v521_v5 = vmax.f32 %v461_v0, 0.0  ;;  %v537_v9 = vpack.c.bf16 %v523_v1, %v522_v6  ;;  %v482_v13 = vadd.f32 %v1860_v2, %v1642_v58 }
 0x1fd   :  { %v473_v7 = vpop.f32.mrf.mxu1 }
 0x1fe   :  { %v536_v8 = vpack.c.bf16 %v521_v5, %v520_v3  ;;  %v474_v11 = vadd.f32 %v1642_v58, %v473_v7  ;;  %v526_v27 = vmax.f32 %v482_v13, 0.0 }
 0x1ff   :  { %v1861_v10 = vpop.f32.mrf.mxu1 }
 0x200   :  { %v485_v12 = vadd.f32 %v1861_v10, %v1642_v58  ;;  %1886 = vmatprep.mubr.bf16.mxu0 %v536_v8  ;;  %v524_v25 = vmax.f32 %v474_v11, 0.0 }
 0x201   :  { %v476_v16 = vpop.f32.mrf.mxu1  ;;  %1887 = vmatmul.mubr.bf16.vlgmr.msra.gmra.mxu0 %v537_v9 }
 0x202   :  { %v477_v22 = vadd.f32 %v1642_v58, %v476_v16  ;;  %v527_v23 = vmax.f32 %v485_v12, 0.0  ;;  %1935 = vmatpush3.bf16.msra.mxu0 %v2105_v57 }
 0x203   :  { %v1864_v24 = vpop.f32.mrf.mxu1  ;;  %1936 = vmatprep.subr.bf16.mxu0 %v2106_v59 }
 0x204   :  { %v525_v26 = vmax.f32 %v477_v22, 0.0  ;;  %v539_v30 = vpack.c.bf16 %v527_v23, %v526_v27  ;;  %v498_v34 = vadd.f32 %v1864_v24, %v1642_v58 }
 0x205   :  { %v489_v28 = vpop.f32.mrf.mxu1 }
 0x206   :  { %v538_v29 = vpack.c.bf16 %v525_v26, %v524_v25  ;;  %v490_v32 = vadd.f32 %v1642_v58, %v489_v28  ;;  %v530_v41 = vmax.f32 %v498_v34, 0.0  ;;  %1937 = vmatpush3.bf16.msra.mxu0 %v2106_v59 }
 0x207   :  { %v1865_v31 = vpop.f32.mrf.mxu1  ;;  %1938 = vmatprep.subr.bf16.mxu0 %v2107_v60 }
 0x208   :  { %v501_v33 = vadd.f32 %v1865_v31, %v1642_v58  ;;  %1890 = vmatprep.mubr.bf16.mxu0 %v538_v29  ;;  %v528_v39 = vmax.f32 %v490_v32, 0.0  ;;  %v2111_v31 = vld [vmem:[#allocation10 + $0x8] sm:$0xff]   ;;  %v2112_v32 = vld [vmem:[#allocation10] sm:$0xff]  }
 0x209   :  { %v492_v35 = vpop.f32.mrf.mxu1  ;;  %1891 = vmatmul.mubr.bf16.gmra.mxu0 %v539_v30  ;;  %v2110_v30 = vld [vmem:[#allocation10 + $0x10] sm:$0xff]  }
 0x20a   :  { %v493_v36 = vadd.f32 %v1642_v58, %v492_v35  ;;  %v531_v37 = vmax.f32 %v501_v33, 0.0  ;;  %1939 = vmatpush3.bf16.msra.mxu0 %v2107_v60  ;;  %v1659_v35 = vld [vmem:[%s2628_s5] ss:$0 sm:$0xff] }
 0x20b   :  { %v1868_v38 = vpop.f32.mrf.mxu1  ;;  %1940 = vmatprep.subr.bf16.mxu0 %v2108_v61 }
 0x20c   :  { %v529_v40 = vmax.f32 %v493_v36, 0.0  ;;  %v541_v44 = vpack.c.bf16 %v531_v37, %v530_v41  ;;  %v514_v48 = vadd.f32 %v1868_v38, %v1642_v58 }
 0x20d   :  { %v505_v42 = vpop.f32.mrf.mxu1 }
 0x20e   :  { %v540_v43 = vpack.c.bf16 %v529_v40, %v528_v39  ;;  %v506_v46 = vadd.f32 %v1642_v58, %v505_v42  ;;  %v534_v54 = vmax.f32 %v514_v48, 0.0  ;;  %1941 = vmatpush3.bf16.msra.mxu0 %v2108_v61 }
 0x20f   :  { %v1869_v45 = vpop.f32.mrf.mxu1 }
 0x210   :  { %v517_v47 = vadd.f32 %v1869_v45, %v1642_v58  ;;  %1894 = vmatprep.mubr.bf16.mxu0 %v540_v43  ;;  %v532_v52 = vmax.f32 %v506_v46, 0.0 }
 0x211   :  { %v508_v49 = vpop.f32.mrf.mxu1  ;;  %1895 = vmatmul.mubr.bf16.gmra.mxu0 %v541_v44 }
 0x212   :  { %v509_v50 = vadd.f32 %v1642_v58, %v508_v49  ;;  %v535_v51 = vmax.f32 %v517_v47, 0.0  ;;  %v2109_v58 = vld [vmem:[#allocation10 + $0x18] sm:$0xff]  }
 0x213   :  { %1942 = vmatprep.subr.bf16.mxu0 %v2109_v58 }
 0x214   :  { %v533_v53 = vmax.f32 %v509_v50, 0.0  ;;  %v543_v56 = vpack.c.bf16 %v535_v51, %v534_v54  ;;  %1943 = vmatpush3.bf16.msra.mxu0 %v2109_v58 }
 0x215   :  { %1944 = vmatprep.subr.bf16.mxu0 %v2110_v30 }
 0x216   :  { %v542_v55 = vpack.c.bf16 %v533_v53, %v532_v52 }
 0x218   :  { %1898 = vmatprep.mubr.bf16.mxu0 %v542_v55  ;;  %1945 = vmatpush3.bf16.msra.mxu0 %v2110_v30 }
 0x219   :  { %1899 = vmatmul.mubr.bf16.gmra.mxu0 %v543_v56  ;;  %1946 = vmatprep.subr.bf16.mxu0 %v2111_v31 }
 0x21c   :  { %1947 = vmatpush3.bf16.msra.mxu0 %v2111_v31 }
 0x21d   :  { %1948 = vmatprep.subr.bf16.mxu0 %v2112_v32 }
 0x220   :  { %1949 = vmatpush3.bf16.msra.mxu0 %v2112_v32 }
 0x2c1   :  { %v1888_v62 = vpop.f32.mrf.mxu0 }
 0x2c3   :  { %v642_v63 = vpop.f32.mrf.mxu0 }
 0x2c5   :  { %v1889_v0 = vpop.f32.mrf.mxu0 }
 0x2c6   :  { %v706_v28 = vpack.c.bf16 %v1889_v0, %v1888_v62 }
 0x2c7   :  { %v645_v1 = vpop.f32.mrf.mxu0 }
 0x2c8   :  { %v705_v29 = vpack.c.bf16 %v645_v1, %v642_v63 }
 0x2c9   :  { %v1892_v2 = vpop.f32.mrf.mxu0 }
 0x2cb   :  { %v658_v3 = vpop.f32.mrf.mxu0 }
 0x2cd   :  { %v1893_v5 = vpop.f32.mrf.mxu0 }
 0x2ce   :  { %v708_v26 = vpack.c.bf16 %v1893_v5, %v1892_v2 }
 0x2cf   :  { %v661_v6 = vpop.f32.mrf.mxu0 }
 0x2d0   :  { %v707_v27 = vpack.c.bf16 %v661_v6, %v658_v3 }
 0x2d1   :  { %v1896_v7 = vpop.f32.mrf.mxu0 }
 0x2d3   :  { %v674_v8 = vpop.f32.mrf.mxu0 }
 0x2d5   :  { %v1897_v9 = vpop.f32.mrf.mxu0 }
 0x2d6   :  { %v710_v24 = vpack.c.bf16 %v1897_v9, %v1896_v7 }
 0x2d7   :  { %v677_v10 = vpop.f32.mrf.mxu0 }
 0x2d8   :  { %v709_v25 = vpack.c.bf16 %v677_v10, %v674_v8 }
 0x2d9   :  { %v1900_v11 = vpop.f32.mrf.mxu0 }
 0x2db   :  { %v690_v12 = vpop.f32.mrf.mxu0 }
 0x2dd   :  { %v1901_v13 = vpop.f32.mrf.mxu0 }
 0x2de   :  { %v712_v16 = vpack.c.bf16 %v1901_v13, %v1900_v11 }
 0x2df   :  { %v693_v22 = vpop.f32.mrf.mxu0 }
 0x2e0   :  { %v711_v23 = vpack.c.bf16 %v693_v22, %v690_v12  ;;  %1902 = vmatprep.subr.bf16.mxu1 %v712_v16 }
 0x2e1   :  { %1903 = vmatpush3.bf16.msra.mxu1 %v712_v16 }
 0x2e2   :  { %1904 = vmatprep.subr.bf16.mxu1 %v711_v23 }
 0x2e5   :  { %1905 = vmatpush3.bf16.msra.mxu1 %v711_v23 }
 0x2e6   :  { %1906 = vmatprep.subr.bf16.mxu1 %v710_v24 }
 0x2e9   :  { %1907 = vmatpush3.bf16.msra.mxu1 %v710_v24 }
 0x2ea   :  { %1908 = vmatprep.subr.bf16.mxu1 %v709_v25 }
 0x2ed   :  { %1909 = vmatpush3.bf16.msra.mxu1 %v709_v25 }
 0x2ee   :  { %1910 = vmatprep.subr.bf16.mxu1 %v708_v26 }
 0x2f1   :  { %1911 = vmatpush3.bf16.msra.mxu1 %v708_v26 }
 0x2f2   :  { %1912 = vmatprep.subr.bf16.mxu1 %v707_v27 }
 0x2f5   :  { %1913 = vmatpush3.bf16.msra.mxu1 %v707_v27 }
 0x2f6   :  { %1914 = vmatprep.subr.bf16.mxu1 %v706_v28 }
 0x2f9   :  { %1915 = vmatpush3.bf16.msra.mxu1 %v706_v28 }
 0x2fa   :  { %1916 = vmatprep.subr.bf16.mxu1 %v705_v29 }
 0x2fd   :  { %1917 = vmatpush3.bf16.msra.mxu1 %v705_v29 }
 0x300   :  { %1919 = vmatmul.mubr.bf16.vlgmr.msra.gmra.mxu1 %v2440_v14 }
 0x301   :  { %1922 = vmatprep.mubr.bf16.mxu1 %v2442_v15 }
 0x308   :  { %1923 = vmatmul.mubr.bf16.gmra.mxu1 %v2446_v17 }
 0x309   :  { %1926 = vmatprep.mubr.bf16.mxu1 %v2448_v18 }
 0x310   :  { %1927 = vmatmul.mubr.bf16.gmra.mxu1 %v2452_v19 }
 0x311   :  { %1930 = vmatprep.mubr.bf16.mxu1 %v2454_v20 }
 0x318   :  { %1931 = vmatmul.mubr.bf16.gmra.mxu1 %v2458_v21 }
 0x319   :  { %1982 = vmatprep.mubr.bf16.mxu1 %v2437_v4 }
 0x3c0   :  { %v1920_v33 = vpop.f32.mrf.mxu1 }
 0x3c1   :  { %v763_v39 = vadd.f32 %v1920_v33, %v1659_v35 }
 0x3c2   :  { %v754_v34 = vpop.f32.mrf.mxu1 }
 0x3c3   :  { %v755_v37 = vadd.f32 %v1659_v35, %v754_v34  ;;  %v819_v46 = vmax.f32 %v763_v39, 0.0  ;;  %v2113_v34 = vld [vmem:[#allocation11 + $0x38] sm:$0xff]  }
 0x3c4   :  { %v1921_v36 = vpop.f32.mrf.mxu1  ;;  %1998 = vmatprep.subr.bf16.mxu0 %v2113_v34 }
 0x3c5   :  { %v766_v38 = vadd.f32 %v1921_v36, %v1659_v35  ;;  %v817_v44 = vmax.f32 %v755_v37, 0.0  ;;  %v2114_v36 = vld [vmem:[#allocation11 + $0x30] sm:$0xff]   ;;  %v2115_v37 = vld [vmem:[#allocation11 + $0x28] sm:$0xff]  }
 0x3c6   :  { %v757_v40 = vpop.f32.mrf.mxu1 }
 0x3c7   :  { %v758_v41 = vadd.f32 %v1659_v35, %v757_v40  ;;  %v820_v42 = vmax.f32 %v766_v38, 0.0  ;;  %v2116_v38 = vld [vmem:[#allocation11 + $0x20] sm:$0xff]  }
 0x3c8   :  { %v1924_v43 = vpop.f32.mrf.mxu1 }
 0x3c9   :  { %v818_v45 = vmax.f32 %v758_v41, 0.0  ;;  %v834_v49 = vpack.c.bf16 %v820_v42, %v819_v46  ;;  %v779_v53 = vadd.f32 %v1924_v43, %v1659_v35 }
 0x3ca   :  { %v770_v47 = vpop.f32.mrf.mxu1 }
 0x3cb   :  { %v833_v48 = vpack.c.bf16 %v818_v45, %v817_v44  ;;  %v771_v51 = vadd.f32 %v1659_v35, %v770_v47  ;;  %v823_v61 = vmax.f32 %v779_v53, 0.0 }
 0x3cc   :  { %v1925_v50 = vpop.f32.mrf.mxu1 }
 0x3cd   :  { %v782_v52 = vadd.f32 %v1925_v50, %v1659_v35  ;;  %1950 = vmatprep.mubr.bf16.mxu0 %v833_v48  ;;  %v821_v59 = vmax.f32 %v771_v51, 0.0 }
 0x3ce   :  { %v773_v54 = vpop.f32.mrf.mxu1  ;;  %1951 = vmatmul.mubr.bf16.vlgmr.msra.gmra.mxu0 %v834_v49 }
 0x3cf   :  { %v774_v55 = vadd.f32 %v1659_v35, %v773_v54  ;;  %v824_v56 = vmax.f32 %v782_v52, 0.0  ;;  %1999 = vmatpush3.bf16.msra.mxu0 %v2113_v34 }
 0x3d0   :  { %v1928_v57 = vpop.f32.mrf.mxu1  ;;  %2000 = vmatprep.subr.bf16.mxu0 %v2114_v36 }
 0x3d1   :  { %v822_v60 = vmax.f32 %v774_v55, 0.0  ;;  %v836_v63 = vpack.c.bf16 %v824_v56, %v823_v61  ;;  %v795_v3 = vadd.f32 %v1928_v57, %v1659_v35 }
 0x3d2   :  { %v786_v58 = vpop.f32.mrf.mxu1 }
 0x3d3   :  { %v835_v62 = vpack.c.bf16 %v822_v60, %v821_v59  ;;  %v787_v1 = vadd.f32 %v1659_v35, %v786_v58  ;;  %v827_v11 = vmax.f32 %v795_v3, 0.0  ;;  %2001 = vmatpush3.bf16.msra.mxu0 %v2114_v36 }
 0x3d4   :  { %v1929_v0 = vpop.f32.mrf.mxu1  ;;  %2002 = vmatprep.subr.bf16.mxu0 %v2115_v37 }
 0x3d5   :  { %v798_v2 = vadd.f32 %v1929_v0, %v1659_v35  ;;  %1954 = vmatprep.mubr.bf16.mxu0 %v835_v62  ;;  %v825_v9 = vmax.f32 %v787_v1, 0.0  ;;  %v2119_v0 = vld [vmem:[#allocation11 + $0x8] sm:$0xff]   ;;  %v2120_v1 = vld [vmem:[#allocation11] sm:$0xff]  }
 0x3d6   :  { %v789_v5 = vpop.f32.mrf.mxu1  ;;  %1955 = vmatmul.mubr.bf16.gmra.mxu0 %v836_v63  ;;  %v2118_v63 = vld [vmem:[#allocation11 + $0x10] sm:$0xff]  }
 0x3d7   :  { %v790_v6 = vadd.f32 %v1659_v35, %v789_v5  ;;  %v828_v7 = vmax.f32 %v798_v2, 0.0  ;;  %2003 = vmatpush3.bf16.msra.mxu0 %v2115_v37  ;;  %v1668_v5 = vld [vmem:[%s2630_s7] ss:$0 sm:$0xff] }
 0x3d8   :  { %v1932_v8 = vpop.f32.mrf.mxu1  ;;  %2004 = vmatprep.subr.bf16.mxu0 %v2116_v38 }
 0x3d9   :  { %v826_v10 = vmax.f32 %v790_v6, 0.0  ;;  %v838_v16 = vpack.c.bf16 %v828_v7, %v827_v11  ;;  %v811_v25 = vadd.f32 %v1932_v8, %v1659_v35 }
 0x3da   :  { %v802_v12 = vpop.f32.mrf.mxu1 }
 0x3db   :  { %v837_v13 = vpack.c.bf16 %v826_v10, %v825_v9  ;;  %v803_v23 = vadd.f32 %v1659_v35, %v802_v12  ;;  %v831_v31 = vmax.f32 %v811_v25, 0.0  ;;  %2005 = vmatpush3.bf16.msra.mxu0 %v2116_v38 }
 0x3dc   :  { %v1933_v22 = vpop.f32.mrf.mxu1 }
 0x3dd   :  { %v814_v24 = vadd.f32 %v1933_v22, %v1659_v35  ;;  %1958 = vmatprep.mubr.bf16.mxu0 %v837_v13  ;;  %v829_v29 = vmax.f32 %v803_v23, 0.0 }
 0x3de   :  { %v805_v26 = vpop.f32.mrf.mxu1  ;;  %1959 = vmatmul.mubr.bf16.gmra.mxu0 %v838_v16 }
 0x3df   :  { %v806_v27 = vadd.f32 %v1659_v35, %v805_v26  ;;  %v832_v28 = vmax.f32 %v814_v24, 0.0  ;;  %v2117_v35 = vld [vmem:[#allocation11 + $0x18] sm:$0xff]  }
 0x3e0   :  { %2006 = vmatprep.subr.bf16.mxu0 %v2117_v35 }
 0x3e1   :  { %v830_v30 = vmax.f32 %v806_v27, 0.0  ;;  %v840_v33 = vpack.c.bf16 %v832_v28, %v831_v31  ;;  %2007 = vmatpush3.bf16.msra.mxu0 %v2117_v35 }
 0x3e2   :  { %2008 = vmatprep.subr.bf16.mxu0 %v2118_v63 }
 0x3e3   :  { %v839_v32 = vpack.c.bf16 %v830_v30, %v829_v29 }
 0x3e5   :  { %1962 = vmatprep.mubr.bf16.mxu0 %v839_v32  ;;  %2009 = vmatpush3.bf16.msra.mxu0 %v2118_v63 }
 0x3e6   :  { %1963 = vmatmul.mubr.bf16.gmra.mxu0 %v840_v33  ;;  %2010 = vmatprep.subr.bf16.mxu0 %v2119_v0 }
 0x3e9   :  { %2011 = vmatpush3.bf16.msra.mxu0 %v2119_v0 }
 0x3ea   :  { %2012 = vmatprep.subr.bf16.mxu0 %v2120_v1 }
 0x3ed   :  { %2013 = vmatpush3.bf16.msra.mxu0 %v2120_v1 }
 0x48e   :  { %v1952_v39 = vpop.f32.mrf.mxu0 }
 0x490   :  { %v939_v40 = vpop.f32.mrf.mxu0 }
 0x492   :  { %v1953_v41 = vpop.f32.mrf.mxu0 }
 0x493   :  { %v1003_v58 = vpack.c.bf16 %v1953_v41, %v1952_v39 }
 0x494   :  { %v942_v42 = vpop.f32.mrf.mxu0 }
 0x495   :  { %v1002_v62 = vpack.c.bf16 %v942_v42, %v939_v40 }
 0x496   :  { %v1956_v43 = vpop.f32.mrf.mxu0 }
 0x498   :  { %v955_v44 = vpop.f32.mrf.mxu0 }
 0x49a   :  { %v1957_v45 = vpop.f32.mrf.mxu0 }
 0x49b   :  { %v1005_v60 = vpack.c.bf16 %v1957_v45, %v1956_v43 }
 0x49c   :  { %v958_v46 = vpop.f32.mrf.mxu0 }
 0x49d   :  { %v1004_v61 = vpack.c.bf16 %v958_v46, %v955_v44 }
 0x49e   :  { %v1960_v47 = vpop.f32.mrf.mxu0 }
 0x4a0   :  { %v971_v48 = vpop.f32.mrf.mxu0 }
 0x4a2   :  { %v1961_v49 = vpop.f32.mrf.mxu0 }
 0x4a3   :  { %v1007_v57 = vpack.c.bf16 %v1961_v49, %v1960_v47 }
 0x4a4   :  { %v974_v50 = vpop.f32.mrf.mxu0 }
 0x4a5   :  { %v1006_v59 = vpack.c.bf16 %v974_v50, %v971_v48 }
 0x4a6   :  { %v1964_v51 = vpop.f32.mrf.mxu0 }
 0x4a8   :  { %v987_v52 = vpop.f32.mrf.mxu0 }
 0x4aa   :  { %v1965_v53 = vpop.f32.mrf.mxu0 }
 0x4ab   :  { %v1009_v54 = vpack.c.bf16 %v1965_v53, %v1964_v51 }
 0x4ac   :  { %v990_v55 = vpop.f32.mrf.mxu0 }
 0x4ad   :  { %v1008_v56 = vpack.c.bf16 %v990_v55, %v987_v52  ;;  %1966 = vmatprep.subr.bf16.mxu1 %v1009_v54 }
 0x4ae   :  { %1967 = vmatpush3.bf16.msra.mxu1 %v1009_v54 }
 0x4af   :  { %1968 = vmatprep.subr.bf16.mxu1 %v1008_v56 }
 0x4b2   :  { %1969 = vmatpush3.bf16.msra.mxu1 %v1008_v56 }
 0x4b3   :  { %1970 = vmatprep.subr.bf16.mxu1 %v1007_v57 }
 0x4b6   :  { %1971 = vmatpush3.bf16.msra.mxu1 %v1007_v57 }
 0x4b7   :  { %1972 = vmatprep.subr.bf16.mxu1 %v1006_v59 }
 0x4ba   :  { %1973 = vmatpush3.bf16.msra.mxu1 %v1006_v59 }
 0x4bb   :  { %1974 = vmatprep.subr.bf16.mxu1 %v1005_v60 }
 0x4be   :  { %1975 = vmatpush3.bf16.msra.mxu1 %v1005_v60 }
 0x4bf   :  { %1976 = vmatprep.subr.bf16.mxu1 %v1004_v61 }
 0x4c2   :  { %1977 = vmatpush3.bf16.msra.mxu1 %v1004_v61 }
 0x4c3   :  { %1978 = vmatprep.subr.bf16.mxu1 %v1003_v58 }
 0x4c6   :  { %1979 = vmatpush3.bf16.msra.mxu1 %v1003_v58 }
 0x4c7   :  { %1980 = vmatprep.subr.bf16.mxu1 %v1002_v62 }
 0x4ca   :  { %1981 = vmatpush3.bf16.msra.mxu1 %v1002_v62 }
 0x4cd   :  { %1983 = vmatmul.mubr.bf16.vlgmr.msra.gmra.mxu1 %v2440_v14 }
 0x4ce   :  { %1986 = vmatprep.mubr.bf16.mxu1 %v2442_v15 }
 0x4d5   :  { %1987 = vmatmul.mubr.bf16.gmra.mxu1 %v2446_v17 }
 0x4d6   :  { %1990 = vmatprep.mubr.bf16.mxu1 %v2448_v18 }
 0x4dd   :  { %1991 = vmatmul.mubr.bf16.gmra.mxu1 %v2452_v19 }
 0x4de   :  { %1994 = vmatprep.mubr.bf16.mxu1 %v2454_v20 }
 0x4e5   :  { %1995 = vmatmul.mubr.bf16.gmra.mxu1 %v2458_v21 }
 0x4e6   :  { %2046 = vmatprep.mubr.bf16.mxu1 %v2437_v4 }
 0x58d   :  { %v1984_v2 = vpop.f32.mrf.mxu1 }
 0x58e   :  { %v1060_v9 = vadd.f32 %v1984_v2, %v1668_v5 }
 0x58f   :  { %v1051_v3 = vpop.f32.mrf.mxu1 }
 0x590   :  { %v1052_v7 = vadd.f32 %v1668_v5, %v1051_v3  ;;  %v1116_v22 = vmax.f32 %v1060_v9, 0.0 }
 0x591   :  { %v1985_v6 = vpop.f32.mrf.mxu1 }
 0x592   :  { %v1063_v8 = vadd.f32 %v1985_v6, %v1668_v5  ;;  %v1114_v13 = vmax.f32 %v1052_v7, 0.0 }
 0x593   :  { %v1054_v4 = vpop.f32.mrf.mxu1 }
 0x594   :  { %v1055_v10 = vadd.f32 %v1668_v5, %v1054_v4  ;;  %v1117_v11 = vmax.f32 %v1063_v8, 0.0 }
 0x595   :  { %v1988_v12 = vpop.f32.mrf.mxu1 }
 0x596   :  { %v1115_v16 = vmax.f32 %v1055_v10, 0.0  ;;  %v1131_v25 = vpack.c.bf16 %v1117_v11, %v1116_v22  ;;  %v1076_v29 = vadd.f32 %v1988_v12, %v1668_v5 }
 0x597   :  { %v1067_v23 = vpop.f32.mrf.mxu1 }
 0x598   :  { %v1130_v24 = vpack.c.bf16 %v1115_v16, %v1114_v13  ;;  %v1068_v27 = vadd.f32 %v1668_v5, %v1067_v23  ;;  %v1120_v37 = vmax.f32 %v1076_v29, 0.0 }
 0x599   :  { %v1989_v26 = vpop.f32.mrf.mxu1 }
 0x59a   :  { %v1079_v28 = vadd.f32 %v1989_v26, %v1668_v5  ;;  %2014 = vmatprep.mubr.bf16.mxu0 %v1130_v24  ;;  %v1118_v34 = vmax.f32 %v1068_v27, 0.0 }
 0x59b   :  { %v1070_v30 = vpop.f32.mrf.mxu1  ;;  %2015 = vmatmul.mubr.bf16.vlgmr.msra.gmra.mxu0 %v1131_v25 }
 0x59c   :  { %v1071_v31 = vadd.f32 %v1668_v5, %v1070_v30  ;;  %v1121_v32 = vmax.f32 %v1079_v28, 0.0 }
 0x59d   :  { %v1992_v33 = vpop.f32.mrf.mxu1 }
 0x59e   :  { %v1119_v36 = vmax.f32 %v1071_v31, 0.0  ;;  %v1133_v39 = vpack.c.bf16 %v1121_v32, %v1120_v37  ;;  %v1092_v43 = vadd.f32 %v1992_v33, %v1668_v5  ;;  %v1411_v33 = vlaneseq }
 0x59f   :  { %v1083_v38 = vpop.f32.mrf.mxu1 }
 0x5a0   :  { %v1132_v35 = vpack.c.bf16 %v1119_v36, %v1118_v34  ;;  %v1084_v41 = vadd.f32 %v1668_v5, %v1083_v38  ;;  %v1124_v50 = vmax.f32 %v1092_v43, 0.0  ;;  %v2494_v34 = vand.u32 127, %v1411_v33  ;;  %v1677_v36 = vld [vmem:[%s2632_s9] ss:$0 sm:$0xff]  ;;  %s2343_s9 = smov [#allocation13]  }
 0x5a1   :  { %v1993_v40 = vpop.f32.mrf.mxu1  ;;  %s1611_s24 = sshll.u32 %s2343_s9, 4  ;;  %s1612_s24 = int_to_ptr.vmem [resolvable:$true] %s1611_s24 }
 0x5a2   :  { %v1095_v42 = vadd.f32 %v1993_v40, %v1668_v5  ;;  %2018 = vmatprep.mubr.bf16.mxu0 %v1132_v35  ;;  %v1122_v48 = vmax.f32 %v1084_v41, 0.0  ;;  %vm1413_vm0 = vcmp.lt.s32.totalorder %v2494_v34, 4  ;;  %s2305_s25 = scalar_lea.vmem %s1612_s24, 2048  ;;  %p2310_p3 = scmp.lt.s32.totalorder %s1612_s24, %s1612_s24 }
 0x5a3   :  { %v1086_v44 = vpop.f32.mrf.mxu1  ;;  %2019 = vmatmul.mubr.bf16.gmra.mxu0 %v1133_v39  ;;  %p2306_p2 = scmp.ne.s32.totalorder %s1612_s24, %s2305_s25  ;;  %p2311_p4 = scmp.lt.s32.totalorder %s2305_s25, %s2305_s25 }
 0x5a4   :  { %v1087_v45 = vadd.f32 %v1668_v5, %v1086_v44  ;;  %v1125_v46 = vmax.f32 %v1095_v42, 0.0 }
 0x5a5   :  { %v1996_v47 = vpop.f32.mrf.mxu1  ;;  %p2312_p5 = por %p2311_p4, %p2310_p3 }
 0x5a6   :  { %v1123_v49 = vmax.f32 %v1087_v45, 0.0  ;;  %v1135_v53 = vpack.c.bf16 %v1125_v46, %v1124_v50  ;;  %v1108_v57 = vadd.f32 %v1996_v47, %v1668_v5 }
 0x5a7   :  { %v1099_v51 = vpop.f32.mrf.mxu1  ;;  %p2313_p6 = pnand %p2312_p5, %p2306_p2 }
 0x5a8   :  { %v1134_v52 = vpack.c.bf16 %v1123_v49, %v1122_v48  ;;  %v1100_v55 = vadd.f32 %v1668_v5, %v1099_v51  ;;  %v1128_v63 = vmax.f32 %v1108_v57, 0.0 }
 0x5a9   :  { %v1997_v54 = vpop.f32.mrf.mxu1 }
 0x5aa   :  { %v1111_v56 = vadd.f32 %v1997_v54, %v1668_v5  ;;  %2022 = vmatprep.mubr.bf16.mxu0 %v1134_v52  ;;  %v1126_v58 = vmax.f32 %v1100_v55, 0.0 }
 0x5ab   :  { %v1102_v59 = vpop.f32.mrf.mxu1  ;;  %2023 = vmatmul.mubr.bf16.gmra.mxu0 %v1135_v53 }
 0x5ac   :  { %v1103_v60 = vadd.f32 %v1668_v5, %v1102_v59  ;;  %v1129_v61 = vmax.f32 %v1111_v56, 0.0 }
 0x5ae   :  { %v1127_v62 = vmax.f32 %v1103_v60, 0.0  ;;  %v1137_v1 = vpack.c.bf16 %v1129_v61, %v1128_v63 }
 0x5b0   :  { %v1136_v0 = vpack.c.bf16 %v1127_v62, %v1126_v58 }
 0x5b2   :  { %2026 = vmatprep.mubr.bf16.mxu0 %v1136_v0 }
 0x5b3   :  { %2027 = vmatmul.mubr.bf16.gmra.mxu0 %v1137_v1 }
 0x65b   :  { %v2016_v2 = vpop.f32.mrf.mxu0 }
 0x65d   :  { %v1236_v3 = vpop.f32.mrf.mxu0 }
 0x65f   :  { %v2017_v6 = vpop.f32.mrf.mxu0 }
 0x660   :  { %v1300_v31 = vpack.c.bf16 %v2017_v6, %v2016_v2 }
 0x661   :  { %v1239_v7 = vpop.f32.mrf.mxu0 }
 0x662   :  { %v1299_v32 = vpack.c.bf16 %v1239_v7, %v1236_v3 }
 0x663   :  { %v2020_v8 = vpop.f32.mrf.mxu0 }
 0x665   :  { %v1252_v9 = vpop.f32.mrf.mxu0 }
 0x667   :  { %v2021_v4 = vpop.f32.mrf.mxu0 }
 0x668   :  { %v1302_v29 = vpack.c.bf16 %v2021_v4, %v2020_v8 }
 0x669   :  { %v1255_v10 = vpop.f32.mrf.mxu0 }
 0x66a   :  { %v1301_v30 = vpack.c.bf16 %v1255_v10, %v1252_v9 }
 0x66b   :  { %v2024_v11 = vpop.f32.mrf.mxu0 }
 0x66d   :  { %v1268_v12 = vpop.f32.mrf.mxu0 }
 0x66f   :  { %v2025_v13 = vpop.f32.mrf.mxu0 }
 0x670   :  { %v1304_v27 = vpack.c.bf16 %v2025_v13, %v2024_v11 }
 0x671   :  { %v1271_v5 = vpop.f32.mrf.mxu0 }
 0x672   :  { %v1303_v28 = vpack.c.bf16 %v1271_v5, %v1268_v12 }
 0x673   :  { %v2028_v16 = vpop.f32.mrf.mxu0 }
 0x675   :  { %v1284_v22 = vpop.f32.mrf.mxu0 }
 0x677   :  { %v2029_v23 = vpop.f32.mrf.mxu0 }
 0x678   :  { %v1306_v24 = vpack.c.bf16 %v2029_v23, %v2028_v16 }
 0x679   :  { %v1287_v25 = vpop.f32.mrf.mxu0 }
 0x67a   :  { %v1305_v26 = vpack.c.bf16 %v1287_v25, %v1284_v22  ;;  %2030 = vmatprep.subr.bf16.mxu1 %v1306_v24 }
 0x67b   :  { %2031 = vmatpush3.bf16.msra.mxu1 %v1306_v24 }
 0x67c   :  { %2032 = vmatprep.subr.bf16.mxu1 %v1305_v26 }
 0x67f   :  { %2033 = vmatpush3.bf16.msra.mxu1 %v1305_v26 }
 0x680   :  { %2034 = vmatprep.subr.bf16.mxu1 %v1304_v27 }
 0x683   :  { %2035 = vmatpush3.bf16.msra.mxu1 %v1304_v27 }
 0x684   :  { %2036 = vmatprep.subr.bf16.mxu1 %v1303_v28 }
 0x687   :  { %2037 = vmatpush3.bf16.msra.mxu1 %v1303_v28 }
 0x688   :  { %2038 = vmatprep.subr.bf16.mxu1 %v1302_v29 }
 0x68b   :  { %2039 = vmatpush3.bf16.msra.mxu1 %v1302_v29 }
 0x68c   :  { %2040 = vmatprep.subr.bf16.mxu1 %v1301_v30 }
 0x68f   :  { %2041 = vmatpush3.bf16.msra.mxu1 %v1301_v30 }
 0x690   :  { %2042 = vmatprep.subr.bf16.mxu1 %v1300_v31 }
 0x693   :  { %2043 = vmatpush3.bf16.msra.mxu1 %v1300_v31 }
 0x694   :  { %2044 = vmatprep.subr.bf16.mxu1 %v1299_v32 }
 0x697   :  { %2045 = vmatpush3.bf16.msra.mxu1 %v1299_v32 }
 0x69a   :  { %2047 = vmatmul.mubr.bf16.vlgmr.msra.gmra.mxu1 %v2440_v14 }
 0x69b   :  { %2050 = vmatprep.mubr.bf16.mxu1 %v2442_v15 }
 0x6a2   :  { %2051 = vmatmul.mubr.bf16.gmra.mxu1 %v2446_v17 }
 0x6a3   :  { %2054 = vmatprep.mubr.bf16.mxu1 %v2448_v18 }
 0x6aa   :  { %2055 = vmatmul.mubr.bf16.gmra.mxu1 %v2452_v19 }
 0x6ab   :  { %2058 = vmatprep.mubr.bf16.mxu1 %v2454_v20 }
 0x6b2   :  { %2059 = vmatmul.mubr.bf16.gmra.mxu1 %v2458_v21 }
 0x75a   :  { %v2048_v14 = vpop.f32.mrf.mxu1 }
 0x75b   :  { %v1357_v15 = vadd.f32 %v2048_v14, %v1677_v36 }
 0x75c   :  { %v1348_v17 = vpop.f32.mrf.mxu1 }
 0x75d   :  { %v1349_v37 = vadd.f32 %v1677_v36, %v1348_v17  ;;  %v1416_v18 = vsel %vm1413_vm0, %v1357_v15, -1e+30 }
 0x75e   :  { %1434 = vmax.xlane.f32.xlu1 %v1416_v18  ;;  %v2049_v19 = vpop.f32.mrf.mxu1 }
 0x75f   :  { %v1360_v20 = vadd.f32 %v2049_v19, %v1677_v36  ;;  %v1414_v21 = vsel %vm1413_vm0, %v1349_v37, -1e+30 }
 0x760   :  { %v1351_v38 = vpop.f32.mrf.mxu1  ;;  %1430 = vmax.xlane.f32.xlu0 %v1414_v21 }
 0x761   :  { %v1352_v35 = vadd.f32 %v1677_v36, %v1351_v38  ;;  %v1417_v39 = vsel %vm1413_vm0, %v1360_v20, -1e+30 }
 0x762   :  { %1436 = vmax.xlane.f32.xlu1 %v1417_v39  ;;  %v2052_v40 = vpop.f32.mrf.mxu1 }
 0x763   :  { %v1373_v41 = vadd.f32 %v2052_v40, %v1677_v36  ;;  %v1415_v42 = vsel %vm1413_vm0, %v1352_v35, -1e+30 }
 0x764   :  { %v1364_v43 = vpop.f32.mrf.mxu1  ;;  %1432 = vmax.xlane.f32.xlu0 %v1415_v42 }
 0x765   :  { %v1365_v45 = vadd.f32 %v1677_v36, %v1364_v43  ;;  %v1420_v47 = vsel %vm1413_vm0, %v1373_v41, -1e+30 }
 0x766   :  { %v2053_v44 = vpop.f32.mrf.mxu1 }
 0x767   :  { %v1376_v46 = vadd.f32 %v2053_v44, %v1677_v36  ;;  %v1418_v53 = vsel %vm1413_vm0, %v1365_v45, -1e+30 }
 0x768   :  { %v1367_v48 = vpop.f32.mrf.mxu1  ;;  %1442 = vmax.xlane.f32.xlu0 %v1420_v47 }
 0x769   :  { %v1368_v49 = vadd.f32 %v1677_v36, %v1367_v48  ;;  %v1421_v50 = vsel %vm1413_vm0, %v1376_v46, -1e+30 }
 0x76a   :  { %1444 = vmax.xlane.f32.xlu1 %v1421_v50  ;;  %v2056_v51 = vpop.f32.mrf.mxu1 }
 0x76b   :  { %v1389_v52 = vadd.f32 %v2056_v51, %v1677_v36  ;;  %v1419_v55 = vsel %vm1413_vm0, %v1368_v49, -1e+30 }
 0x76c   :  { %v1380_v54 = vpop.f32.mrf.mxu1  ;;  %1438 = vmax.xlane.f32.xlu0 %v1418_v53 }
 0x76d   :  { %v1381_v57 = vadd.f32 %v1677_v36, %v1380_v54  ;;  %v1424_v60 = vsel %vm1413_vm0, %v1389_v52, -1e+30 }
 0x76e   :  { %v2057_v56 = vpop.f32.mrf.mxu1  ;;  %1440 = vmax.xlane.f32.xlu1 %v1419_v55 }
 0x76f   :  { %v1392_v59 = vadd.f32 %v2057_v56, %v1677_v36  ;;  %v2522_v0 = vsel %vm1413_vm0, %v1381_v57, -1e+30 }
 0x770   :  { %v1383_v61 = vpop.f32.mrf.mxu1  ;;  %1450 = vmax.xlane.f32.xlu0 %v1424_v60 }
 0x771   :  { %v1384_v58 = vadd.f32 %v1677_v36, %v1383_v61  ;;  %v1425_v62 = vsel %vm1413_vm0, %v1392_v59, -1e+30 }
 0x772   :  { %v2060_v63 = vpop.f32.mrf.mxu1  ;;  %1452 = vmax.xlane.f32.xlu1 %v1425_v62 }
 0x773   :  { %v2527_v3 = vsel %vm1413_vm0, %v1384_v58, -1e+30  ;;  %v1405_v7 = vadd.f32 %v2060_v63, %v1677_v36 }
 0x774   :  { %v1396_v1 = vpop.f32.mrf.mxu1  ;;  %1446 = vmax.xlane.f32.xlu0 %v2522_v0 }
 0x775   :  { %v1397_v2 = vadd.f32 %v1677_v36, %v1396_v1  ;;  %v2541_v12 = vsel %vm1413_vm0, %v1405_v7, -1e+30 }
 0x776   :  { %v2061_v6 = vpop.f32.mrf.mxu1  ;;  %1448 = vmax.xlane.f32.xlu1 %v2527_v3 }
 0x777   :  { %v2532_v8 = vsel %vm1413_vm0, %v1397_v2, -1e+30  ;;  %v1408_v10 = vadd.f32 %v2061_v6, %v1677_v36 }
 0x778   :  { %v1399_v9 = vpop.f32.mrf.mxu1  ;;  %1454 = vmax.xlane.f32.xlu0 %v2532_v8 }
 0x779   :  { %v1400_v4 = vadd.f32 %v1677_v36, %v1399_v9  ;;  %v2547_v13 = vsel %vm1413_vm0, %v1408_v10, -1e+30 }
 0x77b   :  { %v2537_v11 = vsel %vm1413_vm0, %v1400_v4, -1e+30 }
 0x77c   :  { %1456 = vmax.xlane.f32.xlu1 %v2537_v11  ;;  %1458 = vmax.xlane.f32.xlu0 %v2541_v12 }
 0x780   :  { %1460 = vmax.xlane.f32.xlu1 %v2547_v13 }
 0x7e7   :  { %v1435_v5 = vpop.xlane.xlu1 %1434 }
 0x7e8   :  { %v2550_v16 = vsub.f32 %v1416_v18, %v1435_v5 }
 0x7e9   :  { %v1431_v22 = vpop.xlane.xlu0 %1430 }
 0x7ea   :  { %v1482_v23 = vmul.f32 1.442695, %v2550_v16  ;;  %v2553_v24 = vsub.f32 %v1414_v21, %v1431_v22 }
 0x7eb   :  { %v1437_v25 = vpop.xlane.xlu1 %1436 }
 0x7ec   :  { %2121 = vpow2.f32 %v1482_v23  ;;  %v1478_v26 = vmul.f32 1.442695, %v2553_v24  ;;  %v2556_v27 = vsub.f32 %v1417_v39, %v1437_v25 }
 0x7ed   :  { %v1433_v28 = vpop.xlane.xlu0 %1432 }
 0x7ee   :  { %v1484_v29 = vmul.f32 1.442695, %v2556_v27  ;;  %v2559_v30 = vsub.f32 %v1415_v42, %v1433_v28  ;;  %2123 = vpow2.f32 %v1478_v26 }
 0x7f0   :  { %2125 = vpow2.f32 %v1484_v29  ;;  %v1480_v31 = vmul.f32 1.442695, %v2559_v30 }
 0x7f1   :  { %v1443_v32 = vpop.xlane.xlu0 %1442 }
 0x7f2   :  { %v2562_v33 = vsub.f32 %v1420_v47, %v1443_v32  ;;  %2127 = vpow2.f32 %v1480_v31 }
 0x7f3   :  { %v1445_v34 = vpop.xlane.xlu1 %1444 }
 0x7f4   :  { %v1490_v36 = vmul.f32 1.442695, %v2562_v33  ;;  %v2565_v14 = vsub.f32 %v1421_v50, %v1445_v34 }
 0x7f5   :  { %v1439_v15 = vpop.xlane.xlu0 %1438 }
 0x7f6   :  { %2129 = vpow2.f32 %v1490_v36  ;;  %v1492_v17 = vmul.f32 1.442695, %v2565_v14  ;;  %v2568_v37 = vsub.f32 %v1418_v53, %v1439_v15 }
 0x7f7   :  { %v1441_v18 = vpop.xlane.xlu1 %1440 }
 0x7f8   :  { %2131 = vpow2.f32 %v1492_v17  ;;  %v1486_v19 = vmul.f32 1.442695, %v2568_v37  ;;  %v2571_v20 = vsub.f32 %v1419_v55, %v1441_v18 }
 0x7f9   :  { %v2122_v21 = vpop.eup %2121  ;;  %v1451_v38 = vpop.xlane.xlu0 %1450 }
 0x7fa   :  { %2133 = vpow2.f32 %v1486_v19  ;;  %v1488_v35 = vmul.f32 1.442695, %v2571_v20  ;;  %v2574_v39 = vsub.f32 %v1424_v60, %v1451_v38  ;;  %1514 = vadd.xlane.f32.xlu0 %v2122_v21 }
 0x7fb   :  { %v1453_v40 = vpop.xlane.xlu1 %1452  ;;  %v2124_v41 = vpop.eup %2123 }
 0x7fc   :  { %2135 = vpow2.f32 %v1488_v35  ;;  %v1498_v42 = vmul.f32 1.442695, %v2574_v39  ;;  %v2577_v43 = vsub.f32 %v1425_v62, %v1453_v40 }
 0x7fd   :  { %v2126_v44 = vpop.eup %2125  ;;  %v1447_v45 = vpop.xlane.xlu0 %1446 }
 0x7fe   :  { %2137 = vpow2.f32 %v1498_v42  ;;  %v1500_v46 = vmul.f32 1.442695, %v2577_v43  ;;  %v2581_v47 = vsub.f32 %v2522_v0, %v1447_v45  ;;  %1516 = vadd.xlane.f32.xlu1 %v2126_v44  ;;  %1510 = vadd.xlane.f32.xlu0 %v2124_v41 }
 0x7ff   :  { %v1449_v48 = vpop.xlane.xlu1 %1448  ;;  %v2128_v51 = vpop.eup %2127 }
 0x800   :  { %2139 = vpow2.f32 %v1500_v46  ;;  %v1494_v49 = vmul.f32 1.442695, %v2581_v47  ;;  %v2585_v50 = vsub.f32 %v2527_v3, %v1449_v48 }
 0x801   :  { %v1455_v52 = vpop.xlane.xlu0 %1454 }
 0x802   :  { %2141 = vpow2.f32 %v1494_v49  ;;  %v1496_v53 = vmul.f32 1.442695, %v2585_v50  ;;  %v2589_v54 = vsub.f32 %v2532_v8, %v1455_v52  ;;  %1512 = vadd.xlane.f32.xlu1 %v2128_v51 }
 0x803   :  { %v2130_v55 = vpop.eup %2129 }
 0x804   :  { %2143 = vpow2.f32 %v1496_v53  ;;  %v1502_v56 = vmul.f32 1.442695, %v2589_v54  ;;  %1522 = vadd.xlane.f32.xlu0 %v2130_v55 }
 0x805   :  { %v2132_v57 = vpop.eup %2131  ;;  %v1457_v59 = vpop.xlane.xlu1 %1456 }
 0x806   :  { %v1459_v60 = vpop.xlane.xlu0 %1458  ;;  %2145 = vpow2.f32 %v1502_v56  ;;  %v2593_v61 = vsub.f32 %v2537_v11, %v1457_v59  ;;  %1524 = vadd.xlane.f32.xlu1 %v2132_v57 }
 0x807   :  { %v2596_v58 = vsub.f32 %v2541_v12, %v1459_v60  ;;  %v2134_v62 = vpop.eup %2133 }
 0x808   :  { %v1504_v63 = vmul.f32 1.442695, %v2593_v61  ;;  %1518 = vadd.xlane.f32.xlu0 %v2134_v62 }
 0x809   :  { %v1506_v0 = vmul.f32 1.442695, %v2596_v58  ;;  %v2136_v1 = vpop.eup %2135  ;;  %v1461_v2 = vpop.xlane.xlu1 %1460 }
 0x80a   :  { %2147 = vpow2.f32 %v1504_v63  ;;  %v2601_v3 = vsub.f32 %v2547_v13, %v1461_v2  ;;  %1520 = vadd.xlane.f32.xlu1 %v2136_v1 }
 0x80b   :  { %v2138_v6 = vpop.eup %2137  ;;  %2149 = vpow2.f32 %v1506_v0 }
 0x80c   :  { %v1508_v7 = vmul.f32 1.442695, %v2601_v3  ;;  %1530 = vadd.xlane.f32.xlu0 %v2138_v6 }
 0x80d   :  { %v2140_v8 = vpop.eup %2139 }
 0x80e   :  { %2151 = vpow2.f32 %v1508_v7  ;;  %1532 = vadd.xlane.f32.xlu1 %v2140_v8 }
 0x80f   :  { %v2142_v9 = vpop.eup %2141 }
 0x810   :  { %1526 = vadd.xlane.f32.xlu0 %v2142_v9 }
 0x811   :  { %v2144_v4 = vpop.eup %2143 }
 0x812   :  { %1528 = vadd.xlane.f32.xlu1 %v2144_v4 }
 0x813   :  { %v2146_v10 = vpop.eup %2145 }
 0x814   :  { %1534 = vadd.xlane.f32.xlu0 %v2146_v10 }
 0x817   :  { %v2148_v11 = vpop.eup %2147 }
 0x818   :  { %v2150_v12 = vpop.eup %2149  ;;  %1536 = vadd.xlane.f32.xlu1 %v2148_v11 }
 0x819   :  { %1538 = vadd.xlane.f32.xlu0 %v2150_v12 }
 0x81b   :  { %v2152_v13 = vpop.eup %2151 }
 0x81c   :  { %1540 = vadd.xlane.f32.xlu1 %v2152_v13 }
 0x883   :  { %v1515_v5 = vpop.xlane.xlu0 %1514 }
 0x884   :  { %2153 = vlog2.f32 %v1515_v5 }
 0x887   :  { %v1517_v22 = vpop.xlane.xlu1 %1516  ;;  %v1511_v23 = vpop.xlane.xlu0 %1510 }
 0x888   :  { %2155 = vlog2.f32 %v1517_v22 }
 0x889   :  { %2157 = vlog2.f32 %v1511_v23 }
 0x88b   :  { %v1513_v25 = vpop.xlane.xlu1 %1512 }
 0x88c   :  { %2159 = vlog2.f32 %v1513_v25 }
 0x88d   :  { %v1523_v26 = vpop.xlane.xlu0 %1522 }
 0x88e   :  { %2161 = vlog2.f32 %v1523_v26 }
 0x88f   :  { %v1525_v28 = vpop.xlane.xlu1 %1524 }
 0x890   :  { %2163 = vlog2.f32 %v1525_v28 }
 0x891   :  { %v2154_v29 = vpop.eup %2153  ;;  %v1519_v31 = vpop.xlane.xlu0 %1518 }
 0x892   :  { %v1547_v32 = vmul.f32 0.6931472, %v2154_v29  ;;  %2165 = vlog2.f32 %v1519_v31 }
 0x893   :  { %v1521_v34 = vpop.xlane.xlu1 %1520 }
 0x894   :  { %v1576_v36 = vsub.f32 %v2550_v16, %v1547_v32  ;;  %2167 = vlog2.f32 %v1521_v34 }
 0x895   :  { %v2156_v15 = vpop.eup %2155  ;;  %v1531_v17 = vpop.xlane.xlu0 %1530 }
 0x896   :  { %v2158_v18 = vpop.eup %2157  ;;  %1592 = vst [vmem:[#allocation13 + $0x10] sm:$0xff] %v1576_v36  ;;  %v1549_v19 = vmul.f32 0.6931472, %v2156_v15  ;;  %2169 = vlog2.f32 %v1531_v17 }
 0x897   :  { %v1543_v21 = vmul.f32 0.6931472, %v2158_v18  ;;  %v1533_v38 = vpop.xlane.xlu1 %1532 }
 0x898   :  { %v1577_v35 = vsub.f32 %v2556_v27, %v1549_v19  ;;  %2171 = vlog2.f32 %v1533_v38 }
 0x899   :  { %v2160_v40 = vpop.eup %2159  ;;  %v1574_v41 = vsub.f32 %v2553_v24, %v1543_v21  ;;  %v1527_v42 = vpop.xlane.xlu0 %1526 }
 0x89a   :  { %1593 = vst [vmem:[#allocation13 + $0x18] sm:$0xff] %v1577_v35  ;;  %v1545_v44 = vmul.f32 0.6931472, %v2160_v40  ;;  %2173 = vlog2.f32 %v1527_v42 }
 0x89b   :  { %v2162_v16 = vpop.eup %2161  ;;  %1590 = vst [vmem:[#allocation13] sm:$0xff] %v1574_v41  ;;  %v1529_v45 = vpop.xlane.xlu1 %1528 }
 0x89c   :  { %v1575_v46 = vsub.f32 %v2559_v30, %v1545_v44  ;;  %v1555_v48 = vmul.f32 0.6931472, %v2162_v16  ;;  %2175 = vlog2.f32 %v1529_v45 }
 0x89d   :  { %v2164_v49 = vpop.eup %2163  ;;  %v1535_v51 = vpop.xlane.xlu0 %1534 }
 0x89e   :  { %1591 = vst [vmem:[#allocation13 + $0x8] sm:$0xff] %v1575_v46  ;;  %v1580_v27 = vsub.f32 %v2562_v33, %v1555_v48  ;;  %v1557_v52 = vmul.f32 0.6931472, %v2164_v49  ;;  %2177 = vlog2.f32 %v1535_v51 }
 0x89f   :  { %v2166_v53 = vpop.eup %2165 }
 0x8a0   :  { %1596 = vst [vmem:[#allocation13 + $0x30] sm:$0xff] %v1580_v27  ;;  %v1581_v24 = vsub.f32 %v2565_v14, %v1557_v52  ;;  %v1551_v55 = vmul.f32 0.6931472, %v2166_v53 }
 0x8a1   :  { %v2168_v56 = vpop.eup %2167  ;;  %v1537_v57 = vpop.xlane.xlu1 %1536 }
 0x8a2   :  { %1597 = vst [vmem:[#allocation13 + $0x38] sm:$0xff] %v1581_v24  ;;  %v1578_v59 = vsub.f32 %v2568_v37, %v1551_v55  ;;  %v1553_v30 = vmul.f32 0.6931472, %v2168_v56  ;;  %2179 = vlog2.f32 %v1537_v57  ;;  %v1539_v60 = vpop.xlane.xlu0 %1538 }
 0x8a3   :  { %v2170_v62 = vpop.eup %2169  ;;  %2181 = vlog2.f32 %v1539_v60 }
 0x8a4   :  { %1594 = vst [vmem:[#allocation13 + $0x20] sm:$0xff] %v1578_v59  ;;  %v1579_v33 = vsub.f32 %v2571_v20, %v1553_v30  ;;  %v1563_v63 = vmul.f32 0.6931472, %v2170_v62 }
 0x8a5   :  { %v2172_v0 = vpop.eup %2171  ;;  %v1541_v1 = vpop.xlane.xlu1 %1540 }
 0x8a6   :  { %1595 = vst [vmem:[#allocation13 + $0x28] sm:$0xff] %v1579_v33  ;;  %v1584_v14 = vsub.f32 %v2574_v39, %v1563_v63  ;;  %v1565_v2 = vmul.f32 0.6931472, %v2172_v0  ;;  %2183 = vlog2.f32 %v1541_v1 }
 0x8a7   :  { %v2174_v6 = vpop.eup %2173 }
 0x8a8   :  { %1600 = vst [vmem:[#allocation13 + $0x50] sm:$0xff] %v1584_v14  ;;  %v1585_v37 = vsub.f32 %v2577_v43, %v1565_v2  ;;  %v1559_v7 = vmul.f32 0.6931472, %v2174_v6 }
 0x8a9   :  { %v2176_v8 = vpop.eup %2175 }
 0x8aa   :  { %1601 = vst [vmem:[#allocation13 + $0x58] sm:$0xff] %v1585_v37  ;;  %v1582_v9 = vsub.f32 %v2581_v47, %v1559_v7  ;;  %v1561_v4 = vmul.f32 0.6931472, %v2176_v8 }
 0x8ab   :  { %v2178_v10 = vpop.eup %2177 }
 0x8ac   :  { %1598 = vst [vmem:[#allocation13 + $0x40] sm:$0xff] %v1582_v9  ;;  %v1583_v20 = vsub.f32 %v2585_v50, %v1561_v4  ;;  %v1567_v11 = vmul.f32 0.6931472, %v2178_v10 }
 0x8ae   :  { %1599 = vst [vmem:[#allocation13 + $0x48] sm:$0xff] %v1583_v20  ;;  %v1586_v39 = vsub.f32 %v2589_v54, %v1567_v11 }
 0x8af   :  { %v2180_v12 = vpop.eup %2179 }
 0x8b0   :  { %v2182_v13 = vpop.eup %2181  ;;  %1602 = vst [vmem:[#allocation13 + $0x60] sm:$0xff] %v1586_v39  ;;  %v1569_v5 = vmul.f32 0.6931472, %v2180_v12 }
 0x8b1   :  { %v1571_v22 = vmul.f32 0.6931472, %v2182_v13 }
 0x8b2   :  { %v1587_v43 = vsub.f32 %v2593_v61, %v1569_v5 }
 0x8b3   :  { %v2184_v23 = vpop.eup %2183  ;;  %v1588_v25 = vsub.f32 %v2596_v58, %v1571_v22 }
 0x8b4   :  { %1603 = vst [vmem:[#allocation13 + $0x68] sm:$0xff] %v1587_v43  ;;  %v1573_v47 = vmul.f32 0.6931472, %v2184_v23 }
 0x8b5   :  { %1604 = vst [vmem:[#allocation13 + $0x70] sm:$0xff] %v1588_v25 }
 0x8b6   :  { %v1589_v50 = vsub.f32 %v2601_v3, %v1573_v47 }
 0x8b8   :  { %1605 = vst [vmem:[#allocation13 + $0x78] sm:$0xff] %v1589_v50 }
 0x8b9   :  { %2316 = shalt.err (!%p2313_p6)
}
 0x8ba   :  { %s2344_s26 = smov 128   ;;  %s2345_s27 = smov 8  }
 0x8bb   :  { %1617 = dma.vmem_to_hbm [thread:$0]  %s1612_s24, 2048, %s2633_s10, [#allocation4], %s2344_s26, %s2344_s26, %s2345_s27  }
 0x8bc   :  { %2333 = dma.done.wait [#allocation4], 2048  }
 0x8bd   :  { %2334 = vsyncadd [#allocation4], 4294965248 }
 0x8be   :  { %1621 = vsyncpa [#allocation3], 1 }
 0x8bf   :  { %1622 = vsyncpa [#allocation6], 1 }
 0x8c0   :  { %1623 = vsyncpa [#allocation9], 1 }
 0x8c1   :  { %1624 = vsyncpa [#allocation12], 1 }
 0x8c2   :  { %1625 = vsyncpa [#allocation4], 1 }

</bundles_post_ra>
